<compile_context>
chip_gen: v7x
topology: tpu7x:2x2x1
jax: 0.10.0
libtpu: 0.0.40
codegen_flags: <defaults>
</compile_context>

<pallas_src>
import jax
import jax.numpy as jnp
from jax import lax
from jax.experimental import pallas as pl
from jax.experimental.pallas import tpu as pltpu


def _round_up(x, m):
    return ((x + m - 1) // m) * m


def _conv3x3_kernel(x_ref, xh_ref, w_ref, b_ref, o_ref):
    # x_ref : (1, TH, Wp, Cp)   bf16  main rows of the zero-padded input
    # xh_ref: (1, 8,  Wp, Cp)   bf16  halo rows just below the main block (use 2)
    # w_ref : (9, Cp, TCO)      bf16  3x3 taps flattened, channel-padded
    # b_ref : (1, TCO)          f32
    # o_ref : (1, TH, W, TCO)   f32
    TH = o_ref.shape[1]
    W = o_ref.shape[2]
    TCO = o_ref.shape[3]
    Cp = x_ref.shape[3]

    x_main = x_ref[0]                                   # (TH, Wp, Cp)
    x_halo = xh_ref[0, 0:2]                             # (2,  Wp, Cp)
    x = jnp.concatenate([x_main, x_halo], axis=0)       # (TH + 2, Wp, Cp)

    # f32 accumulator seeded with the bias (saves a final full-tile VPU add).
    acc = jnp.broadcast_to(b_ref[0:1, :], (TH * W, TCO)).astype(jnp.float32)

    # 3x3 conv as 9 MXU matmuls.  kw slice hoisted out of the kh loop: only 3
    # sublane-shift relayouts per tile; kh slice is a cheap leading-dim slice.
    for kw in range(3):
        xs = x[:, kw:kw + W, :]                          # (TH + 2, W, Cp)
        for kh in range(3):
            a = xs[kh:kh + TH].reshape(TH * W, Cp)       # (TH*W, Cp) bf16
            acc = acc + jnp.dot(a, w_ref[kh * 3 + kw],
                                preferred_element_type=jnp.float32)

    o_ref[0] = acc.reshape(TH, W, TCO).astype(o_ref.dtype)


def _choose_tile_h(H, Wp, Cp, TCO, vmem_budget_bytes):
    """Largest H tile (multiple of 8) whose pipelined working set fits the budget."""
    Wout = Wp - 2
    cap = _round_up(H, 8)
    best_th, best_pad = 8, _round_up(H, 8) - H
    th = 8
    while th <= cap:
        footprint = (
            2 * th * Wp * Cp * 2          # main input block, double buffered (bf16)
            + 2 * 8 * Wp * Cp * 2         # halo block, double buffered (bf16)
            + 2 * th * Wout * TCO * 4     # output block, double buffered (f32)
            + 9 * Cp * TCO * 2            # resident weights (bf16)
            + th * Wout * TCO * 4         # accumulator
            + 2 * (th + 2) * Wp * Cp * 2  # concat / shift temporaries
        )
        if footprint <= vmem_budget_bytes:
            pad = _round_up(H, th) - H
            if (pad, -th) < (best_pad, -best_th):
                best_th, best_pad = th, pad
        th += 8
    return best_th


def upsample_conv3x3(x_nchw, weight, bias, *, tile_h=None,
                     vmem_budget_bytes=12 * 1024 * 1024):
    """nn.Conv2d(Cin, Cout, 3, 1, 1) forward.

    x_nchw: (N, Cin, H, W) f32; weight: (3, 3, Cin, Cout) f32; bias: (Cout,) f32.
    Returns (N, Cout, H, W) f32.
    """
    N, Cin, H, W = x_nchw.shape
    Cout = weight.shape[-1]

    LANE = 128
    Cp = _round_up(Cin, LANE)       # lane-dense input channels
    Op = _round_up(Cout, LANE)      # lane-dense output channels
    TCO = LANE                      # one 128-wide output-channel block per step
    Wp = W + 2

    if tile_h is None:
        tile_h = _choose_tile_h(H, Wp, Cp, TCO, vmem_budget_bytes)
    TH = max(8, (int(tile_h) // 8) * 8)
    Hpo = _round_up(H, TH)          # padded output rows (multiple of TH)
    n_h = Hpo // TH
    n_co = Op // TCO
    Hp = Hpo + 8                    # 1 zero row on top, >=7 below (halo slack)

    # Single fused boundary transform: NCHW -> NHWC, zero-pad H/W/C, cast bf16.
    x_nhwc = jnp.transpose(x_nchw, (0, 2, 3, 1))
    x_pad = jnp.pad(x_nhwc, ((0, 0), (1, Hp - H - 1), (1, 1), (0, Cp - Cin)))
    x_pad = x_pad.astype(jnp.bfloat16)

    w_pad = jnp.pad(weight, ((0, 0), (0, 0), (0, Cp - Cin), (0, Op - Cout)))
    w_pad = w_pad.reshape(9, Cp, Op).astype(jnp.bfloat16)
    b_pad = jnp.pad(bias, (0, Op - Cout)).reshape(1, Op).astype(jnp.float32)

    out = pl.pallas_call(
        _conv3x3_kernel,
        out_shape=jax.ShapeDtypeStruct((N, Hpo, W, Op), jnp.float32),
        grid_spec=pltpu.PrefetchScalarGridSpec(
            num_scalar_prefetch=0,
            grid=(N, n_h, n_co),
            in_specs=[
                # main TH rows; block index unchanged across the co axis so the
                # DMA is skipped when only co changes
                pl.BlockSpec((1, TH, Wp, Cp), lambda n, i, co: (n, i, 0, 0)),
                # 8-row halo block starting right below the main block
                pl.BlockSpec((1, 8, Wp, Cp),
                             lambda n, i, co: (n, (i + 1) * (TH // 8), 0, 0)),
                pl.BlockSpec((9, Cp, TCO), lambda n, i, co: (0, 0, co)),
                pl.BlockSpec((1, TCO), lambda n, i, co: (0, co)),
            ],
            out_specs=pl.BlockSpec((1, TH, W, TCO),
                                   lambda n, i, co: (n, i, 0, co)),
        ),
        compiler_params=pltpu.CompilerParams(
            dimension_semantics=("parallel", "parallel", "arbitrary"),
            vmem_limit_bytes=32 * 1024 * 1024,
        ),
    )(x_pad, x_pad, w_pad, b_pad)

    # Drop row/channel padding, back to NCHW for the PyTorch-style interface.
    return jnp.transpose(out[:, :H, :, :Cout], (0, 3, 1, 2))


class UpsamplePallas:
    """Mirrors Upsample(input_size, output_size): a Conv2d(in, out, 3, 1, 1)."""

    def __init__(self, input_size, output_size, key):
        self.input_size = input_size
        self.output_size = output_size
        k_w, k_b = jax.random.split(key)
        fan_in = input_size * 3 * 3
        bound = 1.0 / (fan_in ** 0.5)
        # weight stored as (3, 3, Cin, Cout) for the NHWC kernel
        self.weight = jax.random.uniform(
            k_w, (3, 3, input_size, output_size),
            minval=-bound, maxval=bound, dtype=jnp.float32)
        self.bias = jax.random.uniform(
            k_b, (output_size,), minval=-bound, maxval=bound,
            dtype=jnp.float32)

    def __call__(self, x_nchw):
        return upsample_conv3x3(x_nchw, self.weight, self.bias)


if __name__ == "__main__":
    key = jax.random.PRNGKey(0)
    k_x, k_p = jax.random.split(key)

    N, Cin, Cout, H, W = 2, 4, 8, 16, 16
    x = jax.random.normal(k_x, (N, Cin, H, W), dtype=jnp.float32)

    mod = UpsamplePallas(Cin, Cout, k_p)

    # auto tile size, and an explicit small tile (exercises multi-tile halo path)
    out = jax.block_until_ready(mod(x))
    out_tiled = jax.block_until_ready(
        upsample_conv3x3(x, mod.weight, mod.bias, tile_h=8))
    assert out.shape == (N, Cout, H, W), out.shape
    assert out_tiled.shape == (N, Cout, H, W), out_tiled.shape

    # Reference on the same bf16-rounded activations/weights (kernel feeds the
    # MXU bf16 with f32 accumulation), tight tolerance.
    x_bf = x.astype(jnp.bfloat16).astype(jnp.float32)
    w_bf = mod.weight.astype(jnp.bfloat16).astype(jnp.float32)
    w_oihw_bf = jnp.transpose(w_bf, (3, 2, 0, 1))          # (Cout, Cin, 3, 3)
    ref_bf = lax.conv_general_dilated(
        x_bf, w_oihw_bf, window_strides=(1, 1), padding=((1, 1), (1, 1)),
        dimension_numbers=("NCHW", "OIHW", "NCHW"),
        precision=lax.Precision.HIGHEST,
    ) + mod.bias.reshape(1, Cout, 1, 1)
    assert jnp.allclose(out, ref_bf, atol=1e-3, rtol=1e-3), \
        float(jnp.max(jnp.abs(out - ref_bf)))
    assert jnp.allclose(out_tiled, ref_bf, atol=1e-3, rtol=1e-3), \
        float(jnp.max(jnp.abs(out_tiled - ref_bf)))

    # Loose check against the full-f32 conv (bf16 MXU inputs => looser tol).
    ref32 = lax.conv_general_dilated(
        x, jnp.transpose(mod.weight, (3, 2, 0, 1)),
        window_strides=(1, 1), padding=((1, 1), (1, 1)),
        dimension_numbers=("NCHW", "OIHW", "NCHW"),
        precision=lax.Precision.HIGHEST,
    ) + mod.bias.reshape(1, Cout, 1, 1)
    assert jnp.allclose(out, ref32, atol=5e-2, rtol=5e-2)

    print("KERNEL_OK")
</pallas_src>

<mosaic_0001>
module attributes {stable_mosaic.version = 11 : i64} {
  func.func @_conv3x3_kernel(%arg0: i32, %arg1: i32, %arg2: i32, %arg3: memref<1x16x18x128xbf16, #tpu.memory_space<vmem>>, %arg4: memref<1x8x18x128xbf16, #tpu.memory_space<vmem>>, %arg5: memref<9x128x128xbf16, #tpu.memory_space<vmem>>, %arg6: memref<1x128xf32, #tpu.memory_space<vmem>>, %arg7: memref<1x16x16x128xf32, #tpu.memory_space<vmem>>) attributes {dimension_semantics = [#tpu.dimension_semantics<parallel>, #tpu.dimension_semantics<parallel>, #tpu.dimension_semantics<arbitrary>], iteration_bounds = array<i64: 2, 1, 1>, scalar_prefetch = 0 : i64, scratch_operands = 0 : i64, tpu.core_type = #tpu.core_type<tc>, window_params = [{transform_indices = @transform_0, window_bounds = array<i64: 1, 16, 18, 128>}, {transform_indices = @transform_1, window_bounds = array<i64: 1, 8, 18, 128>}, {transform_indices = @transform_2, window_bounds = array<i64: 9, 128, 128>}, {transform_indices = @transform_3, window_bounds = array<i64: 1, 128>}, {transform_indices = @transform_4, window_bounds = array<i64: 1, 16, 16, 128>}]} {
    %c0 = arith.constant 0 : index
    %c0_0 = arith.constant 0 : index
    %c0_1 = arith.constant 0 : index
    %c0_2 = arith.constant 0 : index
    %0 = vector.load %arg3[%c0, %c0_0, %c0_1, %c0_2] : memref<1x16x18x128xbf16, #tpu.memory_space<vmem>>, vector<1x16x18x128xbf16>
    %1 = vector.shape_cast %0 : vector<1x16x18x128xbf16> to vector<16x18x128xbf16>
    %c0_3 = arith.constant 0 : index
    %c0_4 = arith.constant 0 : index
    %c0_5 = arith.constant 0 : index
    %c0_6 = arith.constant 0 : index
    %2 = vector.load %arg4[%c0_3, %c0_4, %c0_5, %c0_6] : memref<1x8x18x128xbf16, #tpu.memory_space<vmem>>, vector<1x2x18x128xbf16>
    %3 = vector.shape_cast %2 : vector<1x2x18x128xbf16> to vector<2x18x128xbf16>
    %4 = tpu.concatenate %1, %3 in 0 : vector<16x18x128xbf16>, vector<2x18x128xbf16> -> vector<18x18x128xbf16>
    %c0_7 = arith.constant 0 : index
    %c0_8 = arith.constant 0 : index
    %5 = vector.load %arg6[%c0_7, %c0_8] : memref<1x128xf32, #tpu.memory_space<vmem>>, vector<1x128xf32>
    %6 = vector.shape_cast %5 : vector<1x128xf32> to vector<1x128xf32>
    %7 = vector.broadcast %6 : vector<1x128xf32> to vector<256x128xf32>
    %8 = vector.extract_strided_slice %4 {offsets = [0, 0, 0], sizes = [18, 16, 128], strides = [1, 1, 1]} : vector<18x18x128xbf16> to vector<18x16x128xbf16>
    %9 = vector.extract_strided_slice %8 {offsets = [0, 0, 0], sizes = [16, 16, 128], strides = [1, 1, 1]} : vector<18x16x128xbf16> to vector<16x16x128xbf16>
    %10 = vector.shape_cast %9 : vector<16x16x128xbf16> to vector<256x128xbf16>
    %c0_9 = arith.constant 0 : index
    %c0_10 = arith.constant 0 : index
    %c0_11 = arith.constant 0 : index
    %11 = vector.load %arg5[%c0_9, %c0_10, %c0_11] : memref<9x128x128xbf16, #tpu.memory_space<vmem>>, vector<1x128x128xbf16>
    %12 = vector.shape_cast %11 : vector<1x128x128xbf16> to vector<128x128xbf16>
    %cst = arith.constant dense<0.000000e+00> : vector<256x128xf32>
    %13 = tpu.matmul %10, %12, %cst {dimension_numbers = #tpu.dot_dimension_numbers<[1], [0], [0], [1], [0, 0, 1, 1], [], []>} : vector<256x128xbf16>, vector<128x128xbf16>, vector<256x128xf32> -> vector<256x128xf32>
    %14 = arith.addf %7, %13 : vector<256x128xf32>
    %15 = vector.extract_strided_slice %8 {offsets = [1, 0, 0], sizes = [16, 16, 128], strides = [1, 1, 1]} : vector<18x16x128xbf16> to vector<16x16x128xbf16>
    %16 = vector.shape_cast %15 : vector<16x16x128xbf16> to vector<256x128xbf16>
    %c3 = arith.constant 3 : index
    %c0_12 = arith.constant 0 : index
    %c0_13 = arith.constant 0 : index
    %17 = vector.load %arg5[%c3, %c0_12, %c0_13] : memref<9x128x128xbf16, #tpu.memory_space<vmem>>, vector<1x128x128xbf16>
    %18 = vector.shape_cast %17 : vector<1x128x128xbf16> to vector<128x128xbf16>
    %cst_14 = arith.constant dense<0.000000e+00> : vector<256x128xf32>
    %19 = tpu.matmul %16, %18, %cst_14 {dimension_numbers = #tpu.dot_dimension_numbers<[1], [0], [0], [1], [0, 0, 1, 1], [], []>} : vector<256x128xbf16>, vector<128x128xbf16>, vector<256x128xf32> -> vector<256x128xf32>
    %20 = arith.addf %14, %19 : vector<256x128xf32>
    %21 = vector.extract_strided_slice %8 {offsets = [2, 0, 0], sizes = [16, 16, 128], strides = [1, 1, 1]} : vector<18x16x128xbf16> to vector<16x16x128xbf16>
    %22 = vector.shape_cast %21 : vector<16x16x128xbf16> to vector<256x128xbf16>
    %c6 = arith.constant 6 : index
    %c0_15 = arith.constant 0 : index
    %c0_16 = arith.constant 0 : index
    %23 = vector.load %arg5[%c6, %c0_15, %c0_16] : memref<9x128x128xbf16, #tpu.memory_space<vmem>>, vector<1x128x128xbf16>
    %24 = vector.shape_cast %23 : vector<1x128x128xbf16> to vector<128x128xbf16>
    %cst_17 = arith.constant dense<0.000000e+00> : vector<256x128xf32>
    %25 = tpu.matmul %22, %24, %cst_17 {dimension_numbers = #tpu.dot_dimension_numbers<[1], [0], [0], [1], [0, 0, 1, 1], [], []>} : vector<256x128xbf16>, vector<128x128xbf16>, vector<256x128xf32> -> vector<256x128xf32>
    %26 = arith.addf %20, %25 : vector<256x128xf32>
    %27 = vector.extract_strided_slice %4 {offsets = [0, 1, 0], sizes = [18, 16, 128], strides = [1, 1, 1]} : vector<18x18x128xbf16> to vector<18x16x128xbf16>
    %28 = vector.extract_strided_slice %27 {offsets = [0, 0, 0], sizes = [16, 16, 128], strides = [1, 1, 1]} : vector<18x16x128xbf16> to vector<16x16x128xbf16>
    %29 = vector.shape_cast %28 : vector<16x16x128xbf16> to vector<256x128xbf16>
    %c1 = arith.constant 1 : index
    %c0_18 = arith.constant 0 : index
    %c0_19 = arith.constant 0 : index
    %30 = vector.load %arg5[%c1, %c0_18, %c0_19] : memref<9x128x128xbf16, #tpu.memory_space<vmem>>, vector<1x128x128xbf16>
    %31 = vector.shape_cast %30 : vector<1x128x128xbf16> to vector<128x128xbf16>
    %cst_20 = arith.constant dense<0.000000e+00> : vector<256x128xf32>
    %32 = tpu.matmul %29, %31, %cst_20 {dimension_numbers = #tpu.dot_dimension_numbers<[1], [0], [0], [1], [0, 0, 1, 1], [], []>} : vector<256x128xbf16>, vector<128x128xbf16>, vector<256x128xf32> -> vector<256x128xf32>
    %33 = arith.addf %26, %32 : vector<256x128xf32>
    %34 = vector.extract_strided_slice %27 {offsets = [1, 0, 0], sizes = [16, 16, 128], strides = [1, 1, 1]} : vector<18x16x128xbf16> to vector<16x16x128xbf16>
    %35 = vector.shape_cast %34 : vector<16x16x128xbf16> to vector<256x128xbf16>
    %c4 = arith.constant 4 : index
    %c0_21 = arith.constant 0 : index
    %c0_22 = arith.constant 0 : index
    %36 = vector.load %arg5[%c4, %c0_21, %c0_22] : memref<9x128x128xbf16, #tpu.memory_space<vmem>>, vector<1x128x128xbf16>
    %37 = vector.shape_cast %36 : vector<1x128x128xbf16> to vector<128x128xbf16>
    %cst_23 = arith.constant dense<0.000000e+00> : vector<256x128xf32>
    %38 = tpu.matmul %35, %37, %cst_23 {dimension_numbers = #tpu.dot_dimension_numbers<[1], [0], [0], [1], [0, 0, 1, 1], [], []>} : vector<256x128xbf16>, vector<128x128xbf16>, vector<256x128xf32> -> vector<256x128xf32>
    %39 = arith.addf %33, %38 : vector<256x128xf32>
    %40 = vector.extract_strided_slice %27 {offsets = [2, 0, 0], sizes = [16, 16, 128], strides = [1, 1, 1]} : vector<18x16x128xbf16> to vector<16x16x128xbf16>
    %41 = vector.shape_cast %40 : vector<16x16x128xbf16> to vector<256x128xbf16>
    %c7 = arith.constant 7 : index
    %c0_24 = arith.constant 0 : index
    %c0_25 = arith.constant 0 : index
    %42 = vector.load %arg5[%c7, %c0_24, %c0_25] : memref<9x128x128xbf16, #tpu.memory_space<vmem>>, vector<1x128x128xbf16>
    %43 = vector.shape_cast %42 : vector<1x128x128xbf16> to vector<128x128xbf16>
    %cst_26 = arith.constant dense<0.000000e+00> : vector<256x128xf32>
    %44 = tpu.matmul %41, %43, %cst_26 {dimension_numbers = #tpu.dot_dimension_numbers<[1], [0], [0], [1], [0, 0, 1, 1], [], []>} : vector<256x128xbf16>, vector<128x128xbf16>, vector<256x128xf32> -> vector<256x128xf32>
    %45 = arith.addf %39, %44 : vector<256x128xf32>
    %46 = vector.extract_strided_slice %4 {offsets = [0, 2, 0], sizes = [18, 16, 128], strides = [1, 1, 1]} : vector<18x18x128xbf16> to vector<18x16x128xbf16>
    %47 = vector.extract_strided_slice %46 {offsets = [0, 0, 0], sizes = [16, 16, 128], strides = [1, 1, 1]} : vector<18x16x128xbf16> to vector<16x16x128xbf16>
    %48 = vector.shape_cast %47 : vector<16x16x128xbf16> to vector<256x128xbf16>
    %c2 = arith.constant 2 : index
    %c0_27 = arith.constant 0 : index
    %c0_28 = arith.constant 0 : index
    %49 = vector.load %arg5[%c2, %c0_27, %c0_28] : memref<9x128x128xbf16, #tpu.memory_space<vmem>>, vector<1x128x128xbf16>
    %50 = vector.shape_cast %49 : vector<1x128x128xbf16> to vector<128x128xbf16>
    %cst_29 = arith.constant dense<0.000000e+00> : vector<256x128xf32>
    %51 = tpu.matmul %48, %50, %cst_29 {dimension_numbers = #tpu.dot_dimension_numbers<[1], [0], [0], [1], [0, 0, 1, 1], [], []>} : vector<256x128xbf16>, vector<128x128xbf16>, vector<256x128xf32> -> vector<256x128xf32>
    %52 = arith.addf %45, %51 : vector<256x128xf32>
    %53 = vector.extract_strided_slice %46 {offsets = [1, 0, 0], sizes = [16, 16, 128], strides = [1, 1, 1]} : vector<18x16x128xbf16> to vector<16x16x128xbf16>
    %54 = vector.shape_cast %53 : vector<16x16x128xbf16> to vector<256x128xbf16>
    %c5 = arith.constant 5 : index
    %c0_30 = arith.constant 0 : index
    %c0_31 = arith.constant 0 : index
    %55 = vector.load %arg5[%c5, %c0_30, %c0_31] : memref<9x128x128xbf16, #tpu.memory_space<vmem>>, vector<1x128x128xbf16>
    %56 = vector.shape_cast %55 : vector<1x128x128xbf16> to vector<128x128xbf16>
    %cst_32 = arith.constant dense<0.000000e+00> : vector<256x128xf32>
    %57 = tpu.matmul %54, %56, %cst_32 {dimension_numbers = #tpu.dot_dimension_numbers<[1], [0], [0], [1], [0, 0, 1, 1], [], []>} : vector<256x128xbf16>, vector<128x128xbf16>, vector<256x128xf32> -> vector<256x128xf32>
    %58 = arith.addf %52, %57 : vector<256x128xf32>
    %59 = vector.extract_strided_slice %46 {offsets = [2, 0, 0], sizes = [16, 16, 128], strides = [1, 1, 1]} : vector<18x16x128xbf16> to vector<16x16x128xbf16>
    %60 = vector.shape_cast %59 : vector<16x16x128xbf16> to vector<256x128xbf16>
    %c8 = arith.constant 8 : index
    %c0_33 = arith.constant 0 : index
    %c0_34 = arith.constant 0 : index
    %61 = vector.load %arg5[%c8, %c0_33, %c0_34] : memref<9x128x128xbf16, #tpu.memory_space<vmem>>, vector<1x128x128xbf16>
    %62 = vector.shape_cast %61 : vector<1x128x128xbf16> to vector<128x128xbf16>
    %cst_35 = arith.constant dense<0.000000e+00> : vector<256x128xf32>
    %63 = tpu.matmul %60, %62, %cst_35 {dimension_numbers = #tpu.dot_dimension_numbers<[1], [0], [0], [1], [0, 0, 1, 1], [], []>} : vector<256x128xbf16>, vector<128x128xbf16>, vector<256x128xf32> -> vector<256x128xf32>
    %64 = arith.addf %58, %63 : vector<256x128xf32>
    %65 = vector.shape_cast %64 : vector<256x128xf32> to vector<16x16x128xf32>
    %c0_36 = arith.constant 0 : index
    %c0_37 = arith.constant 0 : index
    %c0_38 = arith.constant 0 : index
    %c0_39 = arith.constant 0 : index
    %66 = vector.load %arg7[%c0_36, %c0_37, %c0_38, %c0_39] : memref<1x16x16x128xf32, #tpu.memory_space<vmem>>, vector<1x16x16x128xf32>
    %67 = vector.shape_cast %66 : vector<1x16x16x128xf32> to vector<16x16x128xf32>
    %68 = vector.shape_cast %65 : vector<16x16x128xf32> to vector<1x16x16x128xf32>
    tpu.vector_store %arg7[%c0_36, %c0_37, %c0_38, %c0_39], %68 {strides = array<i32>} : memref<1x16x16x128xf32, #tpu.memory_space<vmem>>, vector<1x16x16x128xf32>,
    return
  }
  func.func @transform_0(%arg0: i32, %arg1: i32, %arg2: i32) -> (i32, i32, i32, i32) {
    %c0_i32 = arith.constant 0 : i32
    %c0_i32_0 = arith.constant 0 : i32
    %c0_i32_1 = arith.constant 0 : i32
    return %arg0, %arg1, %c0_i32, %c0_i32_0 : i32, i32, i32, i32
  }
  func.func @transform_1(%arg0: i32, %arg1: i32, %arg2: i32) -> (i32, i32, i32, i32) {
    %c1_i32 = arith.constant 1 : i32
    %0 = arith.addi %arg1, %c1_i32 : i32
    %c2_i32 = arith.constant 2 : i32
    %1 = arith.muli %0, %c2_i32 : i32
    %c0_i32 = arith.constant 0 : i32
    %c0_i32_0 = arith.constant 0 : i32
    %c0_i32_1 = arith.constant 0 : i32
    return %arg0, %1, %c0_i32, %c0_i32_0 : i32, i32, i32, i32
  }
  func.func @transform_2(%arg0: i32, %arg1: i32, %arg2: i32) -> (i32, i32, i32) {
    %c0_i32 = arith.constant 0 : i32
    %c0_i32_0 = arith.constant 0 : i32
    %c0_i32_1 = arith.constant 0 : i32
    return %c0_i32, %c0_i32_0, %arg2 : i32, i32, i32
  }
  func.func @transform_3(%arg0: i32, %arg1: i32, %arg2: i32) -> (i32, i32) {
    %c0_i32 = arith.constant 0 : i32
    %c0_i32_0 = arith.constant 0 : i32
    return %c0_i32, %arg2 : i32, i32
  }
  func.func @transform_4(%arg0: i32, %arg1: i32, %arg2: i32) -> (i32, i32, i32, i32) {
    %c0_i32 = arith.constant 0 : i32
    %c0_i32_0 = arith.constant 0 : i32
    return %arg0, %arg1, %c0_i32, %arg2 : i32, i32, i32, i32
  }
}

</mosaic_0001>

<bundles_post_ra>
// kernel: tpu_custom_call.1
= control target key start
LH: loop header
LB: loop body
LE: loop exit
PB: predicated region body
PF: predicated region fallthrough
CT: control target
= control target key end

     0   :  { %9 = vsyncpa [#allocation3], 0  ;;  %s6552_s0 = inlined_call_operand.vmem [shape: bf16[2,24,18,128], index: 0, kind: input, shape index: {}]   ;;  %s6553_s1 = inlined_call_operand.vmem [shape: bf16[2,24,18,128], index: 1, kind: input, shape index: {}]   ;;  %s6554_s2 = inlined_call_operand.vmem [shape: bf16[9,128,128], index: 2, kind: input, shape index: {}]   ;;  %s6555_s3 = inlined_call_operand.vmem [shape: f32[1,128], index: 3, kind: input, shape index: {}]   ;;  %s6556_s4 = inlined_call_operand.hbm [shape: f32[2,16,16,128], index: 4, kind: output, shape index: {}]  }
   0x1   :  { %11 = vsyncpa [#allocation3 + $0x1], 0  ;;  %s5276_s15 = smov 0   ;;  %s5278_s16 = smov 0  }
   0x2   :  { %s5280_s17 = smov 0   ;;  %s5282_s18 = smov 0  }
   0x3   :  { %s5284_s19 = smov 0   ;;  %s5286_s20 = smov 0  }
   0x4 LB: > { %s3749_s21 = sadd.s32 4294967295, %s5246_s20   ;;  %s3750_s22 = sadd.s32 4294967294, %s5246_s20   ;;  %s5246_s20 = sphi %s5286_s20, %s17_s20   ;;  %s5242_s19 = sphi %s5284_s19, %s6714_s19   ;;  %s5238_s18 = sphi %s5282_s18, %s6713_s18   ;;  %s5234_s17 = sphi %s5280_s17, %s6712_s17   ;;  %s5230_s16 = sphi %s5278_s16, %s6711_s16   ;;  %s5226_s15 = sphi %s5276_s15, %s6710_s15  }
   0x5   : > { %s36_s23 = sadd.s32 1, %s5242_s19  ;;  %s159_s24 = sadd.s32 1, %s5234_s17 }
   0x6   : > { %p38_p0 = scmp.ge.s32.totalorder %s36_s23, 2  ;;  %p169_p1 = scmp.ne.s32.totalorder %s5234_s17, %s5230_s16 }
   0x7   : > { %p170_p2 = scmp.eq.s32.totalorder %s3749_s21, 1  ;;  %p175_p3 = scmp.ne.s32.totalorder %s5230_s16, %s5226_s15 }
   0x8   : > { %s6716_s23 = smov (%p38_p0, %s36_s23), 0  ;;  %p176_p5 = scmp.eq.s32.totalorder %s3750_s22, 1 }
   0x9   : > { %p5316_p4 = por %p170_p2, %p169_p1  ;;  %s152_s26 = ssub.s32 %s5242_s19, %s6716_s23 }
   0xa   : > { %p3755_p6 = scmp.ge.s32.totalorder %s5246_s20, 1  ;;  %p157_p7 = scmp.eq.s32.totalorder %s152_s26, 0 }
   0xb   : > { %p5323_p8 = por %p176_p5, %p175_p3  ;;  %p249_p9 = scmp.lt.s32.totalorder %s5246_s20, 3 }
   0xc   : > { %s5329_s28 = scalar_select %p157_p7, %s5234_s17, %s159_s24  }
   0xd   : > { %p250_p10 = pnand %p3755_p6, %p249_p9 }
   0xf   : > { %253 = sbr.rel (%p250_p10) target bundleno = 570 (0x23a), region = 36 }
  0x16   : > { %v5052_v0 = vld [vmem:[%s6554_s2] sm:$0xff]   ;;  %p310_p11 = scmp.lt.s32.totalorder %s5238_s18, 1  ;;  %v5054_v2 = vld [vmem:[%s6554_s2 + $0x8] sm:$0xff]   ;;  %v5056_v4 = vld [vmem:[%s6554_s2 + $0x10] sm:$0xff]   ;;  %vm2588_vm0 = vcmask 1042432   ;;  %vm2589_vm1 = vcmask 1046532  }
  0x17   : > { %v5053_v1 = vld [vmem:[%s6554_s2 + $0x100] sm:$0xff]   ;;  %4256 = vmatprep.subr.bf16.mxu1 %v5052_v0  ;;  %v5055_v3 = vld [vmem:[%s6554_s2 + $0x108] sm:$0xff]   ;;  %v5057_v5 = vld [vmem:[%s6554_s2 + $0x110] sm:$0xff]   ;;  %vm1291_vm3 = vsmask.f32 3328  ;;  %s301_s9 = sand.u32 1, %s5230_s16  }
  0x18   : > { %4448 = vmatprep.subr.bf16.mxu0 %v5053_v1  ;;  %4257 = vmatpush3.bf16.msra.mxu1 %v5052_v0  ;;  %s5345_s11 = scalar_select %p310_p11, %s5238_s18, 1  ;;  %v5058_v6 = vld [vmem:[%s6554_s2 + $0x18] sm:$0xff]   ;;  %v5060_v8 = vld [vmem:[%s6554_s2 + $0x20] sm:$0xff]   ;;  %v5062_v10 = vld [vmem:[%s6554_s2 + $0x28] sm:$0xff]   ;;  %vm1292_vm4 = vsmask.f32 7440 }
  0x19   : > { %4449 = vmatpush3.bf16.msra.mxu0 %v5053_v1  ;;  %4258 = vmatprep.subr.bf16.mxu1 %v5054_v2  ;;  %v5059_v7 = vld [vmem:[%s6554_s2 + $0x118] sm:$0xff]   ;;  %v5061_v9 = vld [vmem:[%s6554_s2 + $0x120] sm:$0xff]   ;;  %v5063_v14 = vld [vmem:[%s6554_s2 + $0x128] sm:$0xff]   ;;  %s3756_s14 = sshll.u32 %s301_s9, 8  ;;  %s5248_s29 = smov [#allocation2]  }
  0x1a   : > { %4450 = vmatprep.subr.bf16.mxu0 %v5055_v3  ;;  %s4992_s30 = smul.u32 288, %s5345_s11  ;;  %v5064_v20 = vld [vmem:[%s6554_s2 + $0x30] sm:$0xff]   ;;  %vm5401_vm2 = vmor %vm2588_vm0, %vm2589_vm1  ;;  %v5066_v29 = vld [vmem:[%s6554_s2 + $0x38] sm:$0xff]   ;;  %s4039_s11 = sshll.u32 %s5238_s18, 12 }
  0x1b   : > { %v5065_v25 = vld [vmem:[%s6554_s2 + $0x130] sm:$0xff]   ;;  %v5067_v38 = vld [vmem:[%s6554_s2 + $0x138] sm:$0xff]   ;;  %vm5428_vm5 = vmor %vm1291_vm3, %vm1292_vm4  ;;  %s6506_s18 = scalar_lea.sflag [#allocation3], %s301_s9  ;;  %s5172_s5 = sshll.u32 %s5248_s29, 4  ;;  %s5173_s5 = int_to_ptr.vmem [resolvable:$false] %s5172_s5 }
  0x1c   : > { %4259 = vmatpush3.bf16.msra.mxu1 %v5054_v2  ;;  %s5371_s12 = scalar_lea.vmem %s6552_s0, %s4992_s30  ;;  %v5070_v57 = vld [vmem:[%s6554_s2 + $0xc0] sm:$0xff]   ;;  %s5751_s21 = sadd.s32 192, %s4992_s30 }
  0x1d   : > { %4451 = vmatpush3.bf16.msra.mxu0 %v5055_v3  ;;  %4260 = vmatprep.subr.bf16.mxu1 %v5056_v4  ;;  %v5377_v11 = vld [vmem:[%s5371_s12] sm:$0xf]  ;;  %v5380_v12 = vld [vmem:[%s5371_s12 + $0x4] sm:$0xf]  ;;  %v352_v13 = vld [vmem:[%s5371_s12 + $0xc] sm:$0xf]  ;;  %s5790_s26 = scalar_lea.vmem %s6553_s1, %s5751_s21 }
  0x1e   : > { %4452 = vmatprep.subr.bf16.mxu0 %v5057_v5  ;;  %v3760_v15 = vcombine.low %v5377_v11, %v5380_v12  ;;  %v3924_v16 = vrot.slane %v5377_v11, 9  ;;  %v5390_v17 = vld [vmem:[%s5371_s12 + $0x10] sm:$0xf]  ;;  %v5393_v18 = vld [vmem:[%s5371_s12 + $0x14] sm:$0x1]  ;;  %v1319_v19 = vshrl.u32 %v352_v13, 16 }
  0x1f   : > { %v6557_v21 = vrot.slane %v5380_v12, 5  ;;  %v1322_v24 = vshll.u32 %v352_v13, 16  ;;  %v1328_v26 = vshll.u32 %v5390_v17, 16  ;;  %v1332_v27 = vshrl.u32 %v5390_v17, 16  ;;  %v355_v31 = vld [vmem:[%s5371_s12 + $0x18] sm:$0xf] }
  0x20   : > { %4261 = vmatpush3.bf16.msra.mxu1 %v5056_v4  ;;  %4272 = vmatprep.mubr.bf16.mxu1 %v3760_v15  ;;  %v1321_v23 = vrot.slane %v1319_v19, 4  ;;  %v1338_v28 = vshll.u32 %v5393_v18, 16  ;;  %v356_v36 = vld [vmem:[%s5371_s12 + $0x1c] sm:$0xf]  ;;  %v1343_v37 = vshrl.u32 %v355_v31, 16  ;;  %v1346_v41 = vshll.u32 %v355_v31, 16 }
  0x21   : > { %4453 = vmatpush3.bf16.msra.mxu0 %v5057_v5  ;;  %4262 = vmatprep.subr.bf16.mxu1 %v5058_v6  ;;  %v1324_v30 = vrot.slane %v1322_v24, 5  ;;  %v5419_v32 = vsel %vm5401_vm2, %v3924_v16, %v6557_v21  ;;  %v1330_v33 = vrot.slane %v1328_v26, 5  ;;  %v1334_v34 = vrot.slane %v1332_v27, 4  ;;  %v357_v40 = vld [vmem:[%s5371_s12 + $0x20] sm:$0x1]  ;;  %v5072_v19 = vld [vmem:[%s6554_s2 + $0x1c8] sm:$0xff]  }
  0x22   : > { %4454 = vmatprep.subr.bf16.mxu0 %v5059_v7  ;;  %v1340_v35 = vrot.slane %v1338_v28, 5  ;;  %v1352_v42 = vshll.u32 %v356_v36, 16  ;;  %v1356_v43 = vshrl.u32 %v356_v36, 16  ;;  %v1345_v46 = vrot.slane %v1343_v37, 4  ;;  %v358_v55 = vld [vmem:[%s5371_s12 + $0x24] sm:$0xf] }
  0x23   : > { %v1325_v39 = vor.u32 %v1324_v30, %v1321_v23  ;;  %v1335_v45 = vor.u32 %v1334_v34, %v1330_v33  ;;  %v1362_v47 = vshll.u32 %v357_v40, 16  ;;  %v1348_v49 = vrot.slane %v1346_v41, 5  ;;  %v359_v60 = vld [vmem:[%s5371_s12 + $0x28] sm:$0xf]  ;;  %v360_v61 = vld [vmem:[%s5371_s12 + $0x2c] sm:$0x1] }
  0x24   : > { %4263 = vmatpush3.bf16.msra.mxu1 %v5058_v6  ;;  %v1354_v50 = vrot.slane %v1352_v42, 5  ;;  %v1358_v51 = vrot.slane %v1356_v43, 4  ;;  %v5433_v53 = vcombine.low %v352_v13, %v5390_v17  ;;  %v1367_v62 = vshrl.u32 %v358_v55, 16  ;;  %v5071_v0 = vld [vmem:[%s6554_s2 + $0x1c0] sm:$0xff]   ;;  %v362_v23 = vld [vmem:[%s5371_s12 + $0x34] sm:$0xf] }
  0x25   : > { %4455 = vmatpush3.bf16.msra.mxu0 %v5059_v7  ;;  %4264 = vmatprep.subr.bf16.mxu1 %v5060_v8  ;;  %v1326_v48 = vrot.slane %v1325_v39, 4  ;;  %v1336_v52 = vrot.slane %v1335_v45, 4  ;;  %v1364_v54 = vrot.slane %v1362_v47, 5  ;;  %v1349_v58 = vor.u32 %v1348_v49, %v1345_v46  ;;  %v363_v24 = vld [vmem:[%s5371_s12 + $0x38] sm:$0x1]  ;;  %v5075_v30 = vld [vmem:[%s6554_s2 + $0xc8] sm:$0xff]  }
  0x26   : > { %4456 = vmatprep.subr.bf16.mxu0 %v5061_v9  ;;  %v1359_v59 = vor.u32 %v1358_v51, %v1354_v50  ;;  %v1370_v1 = vshll.u32 %v358_v55, 16  ;;  %v1376_v2 = vshll.u32 %v359_v60, 16  ;;  %v1380_v3 = vshrl.u32 %v359_v60, 16  ;;  %v5076_v40 = vld [vmem:[%s6554_s2 + $0x1d0] sm:$0xff]   ;;  %v364_v46 = vld [vmem:[%s5371_s12 + $0x3c] sm:$0xf] }
  0x27   : > { %v1331_v56 = vsel %vm5428_vm5, %v1326_v48, %v1330_v33  ;;  %v1341_v63 = vsel %vm5428_vm5, %v1336_v52, %v1340_v35  ;;  %v1350_v5 = vrot.slane %v1349_v58, 4  ;;  %v1369_v7 = vrot.slane %v1367_v62, 4  ;;  %v5080_v47 = vld [vmem:[%s6554_s2 + $0xd0] sm:$0xff]   ;;  %v365_v51 = vld [vmem:[%s5371_s12 + $0x40] sm:$0xf]  ;;  %s6433_s21 = scalar_lea.vmem [#allocation2], %s3756_s14 }
  0x28   : > { %4265 = vmatpush3.bf16.msra.mxu1 %v5060_v8  ;;  %v5448_v4 = vcombine.low %v1331_v56, %v1341_v63  ;;  %v1360_v6 = vrot.slane %v1359_v59, 4  ;;  %v1372_v8 = vrot.slane %v1370_v1, 5  ;;  %v1386_v13 = vshll.u32 %v360_v61, 16  ;;  %v366_v52 = vld [vmem:[%s5371_s12 + $0x44] sm:$0x1]  ;;  %v5077_v59 = vld [vmem:[%s6554_s2 + $0x1d8] sm:$0xff]  }
  0x29   : > { %4457 = vmatpush3.bf16.msra.mxu0 %v5061_v9  ;;  %4266 = vmatprep.subr.bf16.mxu1 %v5062_v10  ;;  %v1378_v9 = vrot.slane %v1376_v2, 5  ;;  %v1355_v15 = vsel %vm5428_vm5, %v1350_v5, %v1354_v50  ;;  %v1404_v35 = vshrl.u32 %v362_v23, 16  ;;  %v1410_v39 = vshll.u32 %v363_v24, 16  ;;  %v368_v5 = vld [vmem:[%s5371_s12 + $0x4c] sm:$0xf]  ;;  %s3615_s30 = sshll.u32 %s6433_s21, 4  ;;  %s6499_s30 = int_to_ptr.vmem [resolvable:$true] %s3615_s30 }
  0x2a   : > { %4458 = vmatprep.subr.bf16.mxu0 %v5063_v14  ;;  %6617 = vst [vmem:[#allocation5_spill] sm:$0xff] %v5448_v4  ;;  %4464 = vmatprep.mubr.bf16.mxu0 %v5448_v4  ;;  %v1365_v16 = vsel %vm5428_vm5, %v1360_v6, %v1364_v54  ;;  %v1373_v27 = vor.u32 %v1372_v8, %v1369_v7  ;;  %v1415_v54 = vshrl.u32 %v364_v46, 16  ;;  %v1418_v58 = vshll.u32 %v364_v46, 16  ;;  %v5085_v6 = vld [vmem:[%s6554_s2 + $0xd8] sm:$0xff]   ;;  %s5174_s6 = scalar_lea.vmem %s5173_s5, 8192  ;;  %p5175_p1 = scmp.lt.s32.totalorder %s6499_s30, %s5173_s5 }
  0x2b   : > { %v5463_v26 = vcombine.low %v1355_v15, %v1365_v16  ;;  %v1406_v43 = vrot.slane %v1404_v35, 4  ;;  %v1412_v50 = vrot.slane %v1410_v39, 5  ;;  %v1424_v61 = vshll.u32 %v365_v51, 16  ;;  %v5515_v35 = vld [vmem:[%s5371_s12 + $0x54] sm:$0xf] }
  0x2c   : > { %4267 = vmatpush3.bf16.msra.mxu1 %v5062_v10  ;;  %v1382_v10 = vrot.slane %v1380_v3, 4  ;;  %v1428_v62 = vshrl.u32 %v365_v51, 16  ;;  %v1434_v63 = vshll.u32 %v366_v52, 16  ;;  %v1420_v3 = vrot.slane %v1418_v58, 5 }
  0x2d   : > { %4459 = vmatpush3.bf16.msra.mxu0 %v5063_v14  ;;  %4268 = vmatprep.subr.bf16.mxu1 %v5064_v20  ;;  %v361_v14 = vld [vmem:[%s5371_s12 + $0x30] sm:$0xf]  ;;  %6619 = vst [vmem:[#allocation7_spill] sm:$0xff] %v5463_v26  ;;  %v1426_v7 = vrot.slane %v1424_v61, 5 }
  0x2e   : > { %4460 = vmatprep.subr.bf16.mxu0 %v5065_v25  ;;  %v1383_v28 = vor.u32 %v1382_v10, %v1378_v9  ;;  %v1394_v34 = vshll.u32 %v361_v14, 16  ;;  %v5476_v45 = vcombine.low %v361_v14, %v362_v23  ;;  %v1430_v8 = vrot.slane %v1428_v62, 4  ;;  %v369_v10 = vld [vmem:[%s5371_s12 + $0x50] sm:$0x1]  ;;  %v5545_v62 = vld [vmem:[%s5371_s12 + $0x64] sm:$0xf] }
  0x30   : > { %4269 = vmatpush3.bf16.msra.mxu1 %v5064_v20  ;;  %v5459_v20 = vcombine.low %v355_v31, %v356_v36  ;;  %v1400_v31 = vshll.u32 %v362_v23, 16  ;;  %v1374_v36 = vrot.slane %v1373_v27, 4  ;;  %v1384_v37 = vrot.slane %v1383_v28, 4  ;;  %v5090_v23 = vld [vmem:[%s6554_s2 + $0xe0] sm:$0xff]  }
  0x31   : > { %4461 = vmatpush3.bf16.msra.mxu0 %v5065_v25  ;;  %4270 = vmatprep.subr.bf16.mxu1 %v5066_v29  ;;  %v1391_v25 = vshrl.u32 %v361_v14, 16  ;;  %v1396_v41 = vrot.slane %v1394_v34, 5  ;;  %v1448_v28 = vshll.u32 %v368_v5, 16  ;;  %v1452_v34 = vshrl.u32 %v368_v5, 16 }
  0x32   : > { %4462 = vmatprep.subr.bf16.mxu0 %v5067_v38  ;;  %6618 = vst [vmem:[#allocation6_spill] sm:$0xff] %v5459_v20  ;;  %v1402_v42 = vrot.slane %v1400_v31, 5  ;;  %v1379_v48 = vsel %vm5428_vm5, %v1374_v36, %v1378_v9  ;;  %v1436_v9 = vrot.slane %v1434_v63, 5  ;;  %v1458_v31 = vshll.u32 %v369_v10, 16  ;;  %v5094_v63 = vld [vmem:[%s6554_s2 + $0xe8] sm:$0xff]  }
  0x33   : > { %v1393_v33 = vrot.slane %v1391_v25, 4  ;;  %v1431_v25 = vor.u32 %v1430_v8, %v1426_v7  ;;  %v1450_v39 = vrot.slane %v1448_v28, 5 }
  0x34   : > { %4271 = vmatpush3.bf16.msra.mxu1 %v5066_v29  ;;  %v1388_v29 = vrot.slane %v1386_v13, 5 }
  0x35   : > { %4463 = vmatpush3.bf16.msra.mxu0 %v5067_v38  ;;  %4304 = vmatprep.subr.bf16.mxu1 %v5070_v57  ;;  %v5470_v38 = vcombine.low %v358_v55, %v359_v60  ;;  %v1397_v56 = vor.u32 %v1396_v41, %v1393_v33  ;;  %v1417_v60 = vrot.slane %v1415_v54, 4  ;;  %v1432_v36 = vrot.slane %v1431_v25, 4  ;;  %v5536_v54 = vld [vmem:[%s5371_s12 + $0x60] sm:$0xf] }
  0x36   : > { %4496 = vmatprep.subr.bf16.mxu0 %v5071_v0  ;;  %v1389_v49 = vsel %vm5428_vm5, %v1384_v37, %v1388_v29  ;;  %v5081_v29 = vld [vmem:[%s6554_s2 + $0x1e0] sm:$0xff]   ;;  %v5518_v37 = vcombine.low %v364_v46, %v365_v51  ;;  %v1463_v46 = vshrl.u32 %v5515_v35, 16  ;;  %v1466_v51 = vshll.u32 %v5515_v35, 16 }
  0x37   : > { %4273 = vmatmul.mubr.bf16.vlgmr.msra.gmra.mrb[0].mxu1 %v5433_v53  ;;  %v5488_v55 = vcombine.low %v1379_v48, %v1389_v49  ;;  %v1398_v1 = vrot.slane %v1397_v56, 4  ;;  %v1421_v16 = vor.u32 %v1420_v3, %v1417_v60  ;;  %v1454_v48 = vrot.slane %v1452_v34, 4  ;;  %v5082_v60 = vld [vmem:[%s6554_s2 + $0x1e8] sm:$0xff]  }
  0x38   : > { %4465 = vmatmul.mubr.bf16.vlgmr.msra.gmra.mrb[0].mxu0 %v5463_v26  ;;  %4305 = vmatpush3.bf16.msra.mxu1 %v5070_v57  ;;  %v1407_v57 = vor.u32 %v1406_v43, %v1402_v42  ;;  %v1460_v49 = vrot.slane %v1458_v31, 5  ;;  %v5552_v3 = vld [vmem:[%s5371_s12 + $0x68] sm:$0x1]  ;;  %v1500_v25 = vshrl.u32 %v5545_v62, 16 }
  0x39   : > { %4497 = vmatpush3.bf16.msra.mxu0 %v5071_v0  ;;  %4276 = vmatprep.mubr.bf16.mxu1 %v5459_v20  ;;  %6620 = vst [vmem:[#allocation8_spill] sm:$0xff] %v5488_v55  ;;  %v367_v0 = vld [vmem:[%s5371_s12 + $0x48] sm:$0xf]  ;;  %v1403_v14 = vsel %vm5428_vm5, %v1398_v1, %v1402_v42  ;;  %v5523_v42 = vld [vmem:[%s5371_s12 + $0x58] sm:$0xf]  ;;  %v1455_v58 = vor.u32 %v1454_v48, %v1450_v39 }
  0x3a   : > { %4498 = vmatprep.subr.bf16.mxu0 %v5072_v19  ;;  %4306 = vmatprep.subr.bf16.mxu1 %v5075_v30  ;;  %v1408_v2 = vrot.slane %v1407_v57, 4  ;;  %v1439_v13 = vshrl.u32 %v367_v0, 16  ;;  %v5520_v41 = vcombine.low %v367_v0, %v368_v5  ;;  %v1472_v52 = vshll.u32 %v5523_v42, 16 }
  0x3b   : > { %4468 = vmatprep.mubr.bf16.mxu0 %v5488_v55  ;;  %v1476_v61 = vshrl.u32 %v5523_v42, 16  ;;  %v5560_v8 = vcombine.low %v5515_v35, %v5523_v42  ;;  %v5583_v48 = vcombine.low %v5536_v54, %v5545_v62 }
  0x3c   : > { %4307 = vmatpush3.bf16.msra.mxu1 %v5075_v30  ;;  %v1413_v15 = vsel %vm5428_vm5, %v1408_v2, %v1412_v50  ;;  %v1441_v27 = vrot.slane %v1439_v13, 4  ;;  %v1422_v30 = vrot.slane %v1421_v16, 4  ;;  %v1437_v50 = vsel %vm5428_vm5, %v1432_v36, %v1436_v9 }
  0x3d   : > { %4499 = vmatpush3.bf16.msra.mxu0 %v5072_v19  ;;  %4308 = vmatprep.subr.bf16.mxu1 %v5080_v47  ;;  %v1442_v19 = vshll.u32 %v367_v0, 16  ;;  %v5508_v24 = vcombine.low %v1403_v14, %v1413_v15  ;;  %v1465_v0 = vrot.slane %v1463_v46, 4  ;;  %v1474_v1 = vrot.slane %v1472_v52, 5  ;;  %6623 = vst [vmem:[#allocation11_spill] sm:$0xff] %v5560_v8  ;;  %6625 = vst [vmem:[#allocation13_spill] sm:$0xff] %v5583_v48 }
  0x3e   : > { %4500 = vmatprep.subr.bf16.mxu0 %v5076_v40  ;;  %v1427_v43 = vsel %vm5428_vm5, %v1422_v30, %v1426_v7  ;;  %v1478_v7 = vrot.slane %v1476_v61, 4  ;;  %v1487_v13 = vshrl.u32 %v5536_v54, 16  ;;  %v1490_v14 = vshll.u32 %v5536_v54, 16  ;;  %v5102_v61 = vld [vmem:[%s6554_s2 + $0xf8] sm:$0xff]  }
  0x3f   : > { %4277 = vmatmul.mubr.bf16.gmra.mrb[4].mxu1 %v5470_v38  ;;  %6621 = vst [vmem:[#allocation9_spill] sm:$0xff] %v5508_v24  ;;  %v1444_v33 = vrot.slane %v1442_v19, 5  ;;  %v5538_v56 = vcombine.low %v1427_v43, %v1437_v50  ;;  %v1496_v19 = vshll.u32 %v5545_v62, 16  ;;  %v1502_v36 = vrot.slane %v1500_v25, 4 }
  0x40   : > { %4280 = vmatprep.mubr.bf16.mxu1 %v5476_v45  ;;  %4309 = vmatpush3.bf16.msra.mxu1 %v5080_v47  ;;  %v1479_v16 = vor.u32 %v1478_v7, %v1474_v1 }
  0x41   : > { %4501 = vmatpush3.bf16.msra.mxu0 %v5076_v40  ;;  %4310 = vmatprep.subr.bf16.mxu1 %v5085_v6  ;;  %v5526_v40 = vld [vmem:[%s5371_s12 + $0x5c] sm:$0x1]  ;;  %v1445_v47 = vor.u32 %v1444_v33, %v1441_v27  ;;  %6622 = vst [vmem:[#allocation10_spill] sm:$0xff] %v5538_v56  ;;  %v5086_v27 = vld [vmem:[%s6554_s2 + $0x1f0] sm:$0xff]   ;;  %v1489_v33 = vrot.slane %v1487_v13, 4  ;;  %v1498_v31 = vrot.slane %v1496_v19, 5 }
  0x42   : > { %4469 = vmatmul.mubr.bf16.gmra.mrb[4].mxu0 %v5508_v24  ;;  %4502 = vmatprep.subr.bf16.mxu0 %v5077_v59  ;;  %v1482_v2 = vshll.u32 %v5526_v40, 16  ;;  %v1480_v34 = vrot.slane %v1479_v16, 4  ;;  %v5629_v16 = vld [vmem:[%s5371_s12 + $0x84] sm:$0xf] }
  0x43   : > { %v1446_v57 = vrot.slane %v1445_v47, 4  ;;  %4472 = vmatprep.mubr.bf16.mxu0 %v5538_v56  ;;  %v1503_v50 = vor.u32 %v1502_v36, %v1498_v31  ;;  %6631 = vst [vmem:[#allocation19_spill] sm:$0xff] %v5629_v16  ;;  %v5650_v36 = vld [vmem:[%s5371_s12 + $0x94] sm:$0xf] }
  0x44   : > { %4311 = vmatpush3.bf16.msra.mxu1 %v5085_v6  ;;  %v1456_v6 = vrot.slane %v1455_v58, 4  ;;  %v1484_v10 = vrot.slane %v1482_v2, 5  ;;  %v5612_v2 = vld [vmem:[%s5371_s12 + $0x7c] sm:$0xf]  ;;  %6635 = vst [vmem:[#allocation23_spill] sm:$0xff] %v5650_v36 }
  0x45   : > { %4503 = vmatpush3.bf16.msra.mxu0 %v5077_v59  ;;  %4312 = vmatprep.subr.bf16.mxu1 %v5090_v23  ;;  %v1468_v59 = vrot.slane %v1466_v51, 5  ;;  %v1451_v5 = vsel %vm5428_vm5, %v1446_v57, %v1450_v39  ;;  %v1506_v39 = vshll.u32 %v5552_v3, 16  ;;  %v5087_v57 = vld [vmem:[%s6554_s2 + $0x1f8] sm:$0xff]   ;;  %v1504_v58 = vrot.slane %v1503_v50, 4  ;;  %6628 = vst [vmem:[#allocation16_spill] sm:$0xff] %v5612_v2  ;;  %v5662_v50 = vld [vmem:[%s6554_s2 + $0x180] sm:$0xff]  }
  0x46   : > { %4504 = vmatprep.subr.bf16.mxu0 %v5081_v29  ;;  %v1461_v15 = vsel %vm5428_vm5, %v1456_v6, %v1460_v49  ;;  %v1485_v49 = vsel %vm5428_vm5, %v1480_v34, %v1484_v10  ;;  %v1562_v34 = vshll.u32 %v5629_v16, 16  ;;  %v5681_v6 = vld [vmem:[%s5371_s12 + $0xa8] sm:$0xf] }
  0x47   : > { %4281 = vmatmul.mubr.bf16.gmra.mrb[8].mxu1 %v5518_v37  ;;  %v1469_v9 = vor.u32 %v1468_v59, %v1465_v0  ;;  %v5572_v28 = vcombine.low %v1451_v5, %v1461_v15  ;;  %v1508_v46 = vrot.slane %v1506_v39, 5  ;;  %v5604_v0 = vld [vmem:[%s5371_s12 + $0x70] sm:$0xf] }
  0x48   : > { %4284 = vmatprep.mubr.bf16.mxu1 %v5520_v41  ;;  %4313 = vmatpush3.bf16.msra.mxu1 %v5090_v23  ;;  %v1492_v23 = vrot.slane %v1490_v14, 5  ;;  %v1524_v19 = vshrl.u32 %v5604_v0, 16  ;;  %v1520_v5 = vshll.u32 %v5604_v0, 16 }
  0x49   : > { %4505 = vmatpush3.bf16.msra.mxu0 %v5081_v29  ;;  %4314 = vmatprep.subr.bf16.mxu1 %v5094_v63  ;;  %6624 = vst [vmem:[#allocation12_spill] sm:$0xff] %v5572_v28  ;;  %v1470_v30 = vrot.slane %v1469_v9, 4  ;;  %v5098_v29 = vld [vmem:[%s6554_s2 + $0xf0] sm:$0xff]   ;;  %v1509_v59 = vsel %vm5428_vm5, %v1504_v58, %v1508_v46  ;;  %v5091_v9 = vld [vmem:[%s6554_s2 + $0x80] sm:$0xff]   ;;  %v5095_v46 = vld [vmem:[%s6554_s2 + $0x88] sm:$0xff]  }
  0x4a   : > { %4506 = vmatprep.subr.bf16.mxu0 %v5082_v60  ;;  %4473 = vmatmul.mubr.bf16.gmra.mrb[8].mxu0 %v5572_v28  ;;  %v1493_v47 = vor.u32 %v1492_v23, %v1489_v33  ;;  %v1548_v23 = vshrl.u32 %v5612_v2, 16  ;;  %v5701_v4 = vrot.slane %v1520_v5, 5  ;;  %v1526_v21 = vrot.slane %v1524_v19, 4 }
  0x4b   : > { %v1475_v43 = vsel %vm5428_vm5, %v1470_v30, %v1474_v1  ;;  %v5609_v1 = vld [vmem:[%s5371_s12 + $0x78] sm:$0xf]  ;;  %v5639_v30 = vld [vmem:[%s5371_s12 + $0x88] sm:$0xf]  ;;  %v1564_v19 = vrot.slane %v1562_v34, 5 }
  0x4c   : > { %4315 = vmatpush3.bf16.msra.mxu1 %v5094_v63  ;;  %v5587_v51 = vcombine.low %v1475_v43, %v1485_v49  ;;  %v1494_v52 = vrot.slane %v1493_v47, 4  ;;  %6627 = vst [vmem:[#allocation15_spill] sm:$0xff] %v5609_v1  ;;  %v5635_v25 = vcombine.low %v5609_v1, %v5612_v2  ;;  %6633 = vst [vmem:[#allocation21_spill] sm:$0xff] %v5639_v30  ;;  %v1538_v33 = vshll.u32 %v5609_v1, 16  ;;  %v5657_v49 = vld [vmem:[%s5371_s12 + $0x9c] sm:$0xf] }
  0x4d   : > { %4507 = vmatpush3.bf16.msra.mxu0 %v5082_v60  ;;  %4316 = vmatprep.subr.bf16.mxu1 %v5098_v29  ;;  %v5594_v60 = vld [vmem:[%s5371_s12 + $0x6c] sm:$0xf]  ;;  %v1572_v39 = vshrl.u32 %v5639_v30, 16  ;;  %6636 = vst [vmem:[#allocation24_spill] sm:$0xff] %v5657_v49  ;;  %v5678_v10 = vcombine.low %v5629_v16, %v5639_v30  ;;  %v5099_v43 = vld [vmem:[%s6554_s2 + $0x90] sm:$0xff]   ;;  %v1527_v34 = vor.u32 %v1526_v21, %v5701_v4 }
  0x4e   : > { %6626 = vst [vmem:[#allocation14_spill] sm:$0xff] %v5587_v51  ;;  %4508 = vmatprep.subr.bf16.mxu0 %v5086_v27  ;;  %4476 = vmatprep.mubr.bf16.mxu0 %v5587_v51  ;;  %v1499_v63 = vsel %vm5428_vm5, %v1494_v52, %v1498_v31  ;;  %v5624_v13 = vcombine.low %v5594_v60, %v5604_v0  ;;  %v1511_v14 = vshrl.u32 %v5594_v60, 16  ;;  %v1514_v15 = vshll.u32 %v5594_v60, 16  ;;  %v5647_v31 = vld [vmem:[%s5371_s12 + $0x90] sm:$0xf] }
  0x4f   : > { %4285 = vmatmul.mubr.bf16.gmra.mrb[12].mxu1 %v5560_v8  ;;  %v5616_v7 = vcombine.low %v1499_v63, %v1509_v59  ;;  %6632 = vst [vmem:[#allocation20_spill] sm:$0xff] %v5635_v25  ;;  %6634 = vst [vmem:[#allocation22_spill] sm:$0xff] %v5647_v31  ;;  %v5669_v52 = vld [vmem:[%s5371_s12 + $0xa0] sm:$0xf]  ;;  %v1544_v63 = vshll.u32 %v5612_v2, 16  ;;  %v5693_v47 = vcombine.low %v5647_v31, %v5650_v36 }
  0x50   : > { %4288 = vmatprep.mubr.bf16.mxu1 %v5583_v48  ;;  %4317 = vmatpush3.bf16.msra.mxu1 %v5098_v29  ;;  %6630 = vst [vmem:[#allocation18_spill] sm:$0xff] %v5624_v13  ;;  %v1559_v29 = vshrl.u32 %v5629_v16, 16  ;;  %v1516_v58 = vrot.slane %v1514_v15, 5  ;;  %6637 = vst [vmem:[#allocation25_spill] sm:$0xff] %v5678_v10  ;;  %v5704_v59 = vld [vmem:[%s5371_s12 + $0x80] sm:$0x1] }
  0x51   : > { %4509 = vmatpush3.bf16.msra.mxu0 %v5086_v27  ;;  %6629 = vst [vmem:[#allocation17_spill] sm:$0xff] %v5616_v7  ;;  %4318 = vmatprep.subr.bf16.mxu1 %v5102_v61  ;;  %v1535_v27 = vshrl.u32 %v5609_v1, 16  ;;  %6639 = vst [vmem:[#allocation27_spill] sm:$0xff] %v5693_v47  ;;  %v1540_v48 = vrot.slane %v1538_v33, 5  ;;  %v1550_v16 = vrot.slane %v1548_v23, 4  ;;  %v1574_v33 = vrot.slane %v1572_v39, 4 }
  0x52   : > { %4510 = vmatprep.subr.bf16.mxu0 %v5087_v57  ;;  %4477 = vmatmul.mubr.bf16.gmra.mrb[12].mxu0 %v5616_v7  ;;  %6641 = vst [vmem:[#allocation29_spill] sm:$0xff] %v5704_v59  ;;  %v5712_v2 = vld [vmem:[%s5371_s12 + $0xb8] sm:$0xf]  ;;  %v1561_v5 = vrot.slane %v1559_v29, 4  ;;  %v1554_v39 = vshll.u32 %v5704_v59, 16  ;;  %v1592_v1 = vshll.u32 %v5650_v36, 16 }
  0x53   : > { %4512 = vmatprep.mubr.bf16.mxu0 %v5463_v26  ;;  %v5699_v26 = vld [vmem:[%s5371_s12 + $0xac] sm:$0xf]  ;;  %6643 = vst [vmem:[#allocation31_spill] sm:$0xff] %v5712_v2  ;;  %v5103_v29 = vld [vmem:[%s6554_s2 + $0x98] sm:$0xff]  }
  0x54   : > { %4319 = vmatpush3.bf16.msra.mxu1 %v5102_v61  ;;  %v1596_v61 = vshrl.u32 %v5650_v36, 16  ;;  %6640 = vst [vmem:[#allocation28_spill] sm:$0xff] %v5699_v26 }
  0x55   : > { %4511 = vmatpush3.bf16.msra.mxu0 %v5087_v57  ;;  %v1513_v57 = vrot.slane %v1511_v14, 4  ;;  %4352 = vmatprep.subr.bf16.mxu1 %v5662_v50  ;;  %v5684_v14 = vld [vmem:[%s5371_s12 + $0x74] sm:$0x1] }
  0x56   : > { %4544 = vmatprep.subr.bf16.mxu0 %v5091_v9  ;;  %6638 = vst [vmem:[#allocation26_spill] sm:$0xff] %v5684_v14 }
  0x57   : > { %4289 = vmatmul.mubr.bf16.gmra.mrb[16].mxu1 %v5624_v13  ;;  %v1517_v15 = vor.u32 %v1516_v58, %v1513_v57  ;;  %v1537_v13 = vrot.slane %v1535_v27, 4  ;;  %v5714_v57 = vrot.slane %v1544_v63, 5  ;;  %v1568_v58 = vshll.u32 %v5639_v30, 16  ;;  %v5724_v27 = vld [vmem:[%s5371_s12 + $0x8c] sm:$0x1] }
  0x58   : > { %4292 = vmatprep.mubr.bf16.mxu1 %v5635_v25  ;;  %v1530_v25 = vshll.u32 %v5684_v14, 16  ;;  %6645 = vst [vmem:[#allocation33_spill] sm:$0xff] %v5724_v27 }
  0x59   : > { %v5730_v63 = vrot.slane %v1568_v58, 5  ;;  %v5733_v30 = vrot.slane %v1517_v15, 4  ;;  %v1541_v23 = vor.u32 %v1540_v48, %v1537_v13  ;;  %v1551_v21 = vor.u32 %v1550_v16, %v5714_v57  ;;  %v5761_v16 = vld [vmem:[%s5371_s12 + $0x98] sm:$0x1] }
  0x5a   : > { %4513 = vmatmul.mubr.bf16.vlgmr.msra.gmra.mrb[0].mxu0 %v5488_v55  ;;  %v5708_v55 = vld [vmem:[%s5371_s12 + $0xb4] sm:$0xf]  ;;  %v1565_v58 = vor.u32 %v1564_v19, %v1561_v5  ;;  %v5756_v48 = vcombine.low %v5681_v6, %v5699_v26  ;;  %v5758_v13 = vrot.slane %v1527_v34, 4  ;;  %v1598_v5 = vrot.slane %v1596_v61, 4  ;;  %v5767_v19 = vld [vmem:[%s5371_s12 + $0xa4] sm:$0x1] }
  0x5b   : > { %4545 = vmatpush3.bf16.msra.mxu0 %v5091_v9  ;;  %4516 = vmatprep.mubr.bf16.mxu0 %v5508_v24  ;;  %6642 = vst [vmem:[#allocation30_spill] sm:$0xff] %v5708_v55  ;;  %v5720_v9 = vcombine.low %v5657_v49, %v5669_v52  ;;  %v5735_v24 = vrot.slane %v1530_v25, 5  ;;  %v1575_v15 = vor.u32 %v1574_v33, %v5730_v63  ;;  %v6646_v25 = vshrl.u32 %v5647_v31, 16 }
  0x5c   : > { %4546 = vmatprep.subr.bf16.mxu0 %v5095_v46  ;;  %6648 = vst [vmem:[#allocation34_spill] sm:$0xff] %v5756_v48  ;;  %v6649_v33 = vshrl.u32 %v5657_v49, 16  ;;  %v5776_v34 = vcombine.low %v5708_v55, %v5712_v2  ;;  %v1542_v61 = vrot.slane %v1541_v23, 4  ;;  %v1602_v14 = vshll.u32 %v5761_v16, 16 }
  0x5d   : > { %6644 = vst [vmem:[#allocation32_spill] sm:$0xff] %v5720_v9 }
  0x5e   : > { %6651 = vst [vmem:[#allocation35_spill] sm:$0xff] %v5776_v34 }
  0x5f   : > { %4293 = vmatmul.mubr.bf16.gmra.mrb[20].mxu1 %v5678_v10  ;;  %4547 = vmatpush3.bf16.msra.mxu0 %v5095_v46  ;;  %v1578_v46 = vshll.u32 %v5724_v27, 16  ;;  %v1585_v10 = vrot.slane %v6646_v25, 4  ;;  %v1609_v25 = vrot.slane %v6649_v33, 4  ;;  %v1566_v33 = vrot.slane %v1565_v58, 4 }
  0x60   : > { %4296 = vmatprep.mubr.bf16.mxu1 %v5693_v47  ;;  %4548 = vmatprep.subr.bf16.mxu0 %v5099_v43  ;;  %v6647_v47 = vshll.u32 %v5647_v31, 16  ;;  %v1616_v31 = vshll.u32 %v5669_v52, 16 }
  0x62   : > { %v1588_v59 = vrot.slane %v6647_v47, 5  ;;  %4517 = vmatmul.mubr.bf16.gmra.mrb[4].mxu0 %v5538_v56  ;;  %v5764_v47 = vrot.slane %v1592_v1, 5  ;;  %v6650_v56 = vshll.u32 %v5657_v49, 16  ;;  %v1556_v1 = vrot.slane %v1554_v39, 5 }
  0x63   : > { %4520 = vmatprep.mubr.bf16.mxu0 %v5572_v28  ;;  %4549 = vmatpush3.bf16.msra.mxu0 %v5099_v43  ;;  %v1552_v43 = vrot.slane %v1551_v21, 4  ;;  %v5105_v28 = vld [vmem:[%s6554_s2 + $0xa0] sm:$0xff]   ;;  %v1580_v49 = vrot.slane %v1578_v46, 5  ;;  %v1626_v39 = vshll.u32 %v5767_v19, 16  ;;  %v1523_v21 = vsel %vm5428_vm5, %v5733_v30, %v5701_v4  ;;  %v5805_v46 = vld [vmem:[%s5371_s12 + $0xb0] sm:$0x1] }
  0x64   : > { %v1612_v36 = vrot.slane %v6650_v56, 5  ;;  %4550 = vmatprep.subr.bf16.mxu0 %v5103_v29  ;;  %v1576_v56 = vrot.slane %v1575_v15, 4  ;;  %v1589_v27 = vor.u32 %v1588_v59, %v1585_v10  ;;  %v1599_v8 = vor.u32 %v1598_v5, %v5764_v47  ;;  %6653 = vst [vmem:[#allocation36_spill] sm:$0xff] %v5805_v46  ;;  %v5107_v4 = vld [vmem:[%s6554_s2 + $0xa8] sm:$0xff]  }
  0x65   : > { %v1533_v10 = vsel %vm5428_vm5, %v5758_v13, %v5735_v24  ;;  %v6652_v59 = vshrl.u32 %v5669_v52, 16  ;;  %v1547_v15 = vsel %vm5428_vm5, %v1542_v61, %v5714_v57  ;;  %v6654_v24 = vshrl.u32 %v5681_v6, 16 }
  0x66   : > { %v1613_v23 = vor.u32 %v1612_v36, %v1609_v25  ;;  %v5800_v36 = vrot.slane %v1616_v31, 5  ;;  %v6655_v31 = vshll.u32 %v5681_v6, 16  ;;  %v1640_v13 = vshll.u32 %v5699_v26, 16 }
  0x67   : > { %4297 = vmatmul.mubr.bf16.gmra.mrb[24].mxu1 %v5720_v9  ;;  %4551 = vmatpush3.bf16.msra.mxu0 %v5103_v29  ;;  %v1622_v58 = vrot.slane %v6652_v59, 4  ;;  %v1633_v30 = vrot.slane %v6654_v24, 4  ;;  %v1557_v5 = vsel %vm5428_vm5, %v1552_v43, %v1556_v1  ;;  %v1571_v57 = vsel %vm5428_vm5, %v1566_v33, %v5730_v63  ;;  %v5828_v59 = vld [vmem:[%s5790_s26] sm:$0xf]  ;;  %v5831_v24 = vld [vmem:[%s5790_s26 + $0x4] sm:$0xf] }
  0x68   : > { %4300 = vmatprep.mubr.bf16.mxu1 %v5756_v48  ;;  %4552 = vmatprep.subr.bf16.mxu0 %v5105_v28  ;;  %v1636_v29 = vrot.slane %v6655_v31, 5  ;;  %v1581_v25 = vsel %vm5428_vm5, %v1576_v56, %v1580_v49  ;;  %v5825_v61 = vrot.slane %v1589_v27, 4  ;;  %6656 = vst [vmem:[#allocation37_spill] sm:$0xff] %v5828_v59  ;;  %6657 = vst [vmem:[#allocation38_spill] sm:$0xff] %v5831_v24  ;;  %v1600_v31 = vrot.slane %v1599_v8, 4 }
  0x69   : > { %v1604_v48 = vrot.slane %v1602_v14, 5  ;;  %v5834_v9 = vrot.slane %v1613_v23, 4  ;;  %v5836_v43 = vrot.slane %v1626_v39, 5  ;;  %v1623_v49 = vor.u32 %v1622_v58, %v5800_v36  ;;  %v5109_v14 = vld [vmem:[%s6554_s2 + $0xb0] sm:$0xff]  }
  0x6a   : > { %4521 = vmatmul.mubr.bf16.gmra.mrb[8].mxu0 %v5587_v51  ;;  %v6658_v27 = vshrl.u32 %v5699_v26, 16  ;;  %v1650_v1 = vshll.u32 %v5805_v46, 16  ;;  %v6659_v33 = vshrl.u32 %v5708_v55, 16  ;;  %v1637_v56 = vor.u32 %v1636_v29, %v1633_v30  ;;  %v5862_v51 = vld [vmem:[%s5790_s26 + $0xc] sm:$0xf]  ;;  %v5927_v26 = vld [vmem:[%s6554_s2 + $0x140] sm:$0xff]  }
  0x6b   : > { %4524 = vmatprep.mubr.bf16.mxu0 %v5616_v7  ;;  %4553 = vmatpush3.bf16.msra.mxu0 %v5105_v28  ;;  %v5850_v28 = vrot.slane %v1640_v13, 5  ;;  %v1664_v23 = vshll.u32 %v5712_v2, 16  ;;  %v5854_v39 = vcombine.low %v1523_v21, %v1533_v10  ;;  %v5856_v58 = vcombine.low %v1547_v15, %v1557_v5  ;;  %6663 = vst [vmem:[#allocation41_spill] sm:$0xff] %v5862_v51  ;;  %v5872_v10 = vld [vmem:[%s5371_s12 + $0xbc] sm:$0x1] }
  0x6c   : > { %v1646_v63 = vrot.slane %v6658_v27, 4  ;;  %v5845_v8 = vrot.slane %v6659_v33, 4  ;;  %4554 = vmatprep.subr.bf16.mxu0 %v5107_v4  ;;  %v6662_v27 = vshll.u32 %v5708_v55, 16  ;;  %v2001_v7 = vshrl.u32 %v5828_v59, 16  ;;  %v5877_v13 = vld [vmem:[%s5790_s26 + $0x10] sm:$0xf] }
  0x6d   : > { %6660 = vst [vmem:[#allocation39_spill] sm:$0xff] %v5854_v39  ;;  %6661 = vst [vmem:[#allocation40_spill] sm:$0xff] %v5856_v58  ;;  %v5865_v30 = vcombine.low %v1571_v57, %v1581_v25  ;;  %v1595_v21 = vsel %vm5428_vm5, %v5825_v61, %v5764_v47  ;;  %v2004_v15 = vshll.u32 %v5828_v59, 16  ;;  %v2010_v29 = vshll.u32 %v5831_v24, 16  ;;  %v5918_v55 = vld [vmem:[%s5790_s26 + $0x14] sm:$0x1] }
  0x6e   : > { %v1660_v33 = vrot.slane %v6662_v27, 5  ;;  %6664 = vst [vmem:[#allocation42_spill] sm:$0xff] %v5877_v13  ;;  %v1605_v5 = vsel %vm5428_vm5, %v1600_v31, %v1604_v48  ;;  %v5885_v57 = vrot.slane %v1623_v49, 4  ;;  %v2014_v47 = vshrl.u32 %v5831_v24, 16  ;;  %v5896_v31 = vld [vmem:[%s5790_s26 + $0x8] sm:$0x1]  ;;  %s6497_s26 = scalar_lea.hbm %s6556_s4, %s4039_s11 }
  0x6f   : > { %4301 = vmatmul.mubr.bf16.gmra.mrb[28].mxu1 %v5776_v34  ;;  %4555 = vmatpush3.bf16.msra.mxu0 %v5107_v4  ;;  %v5888_v25 = vrot.slane %v1637_v56, 4  ;;  %v1647_v61 = vor.u32 %v1646_v63, %v5850_v28  ;;  %v5891_v27 = vrot.slane %v1664_v23, 5  ;;  %v6665_v34 = vshrl.u32 %v5712_v2, 16  ;;  %v5111_v49 = vld [vmem:[%s6554_s2 + $0xb8] sm:$0xff]   ;;  %v5904_v63 = vld [vmem:[%s5371_s12 + $0x8] sm:$0x1] }
  0x70   : > { %4320 = vmatprep.mubr.bf16.mxu1 %v5433_v53  ;;  %4556 = vmatprep.subr.bf16.mxu0 %v5109_v14  ;;  %v2003_v4 = vrot.slane %v2001_v7, 4  ;;  %v2006_v53 = vrot.slane %v2004_v15, 5  ;;  %v2287_v56 = vshrl.u32 %v5862_v51, 16  ;;  %v2290_v24 = vshll.u32 %v5862_v51, 16  ;;  %v5106_v7 = vld [vmem:[%s6554_s2 + $0x188] sm:$0xff]  }
  0x71   : > { %v1670_v48 = vrot.slane %v6665_v34, 4  ;;  %v5907_v23 = vrot.slane %v2010_v29, 5  ;;  %v2016_v34 = vrot.slane %v2014_v47, 4  ;;  %v2296_v59 = vshll.u32 %v5877_v13, 16 }
  0x72   : > { %4525 = vmatmul.mubr.bf16.gmra.mrb[12].mxu0 %v5854_v39  ;;  %v2300_v2 = vshrl.u32 %v5877_v13, 16  ;;  %v1661_v15 = vor.u32 %v1660_v33, %v5845_v8  ;;  %v1674_v51 = vshll.u32 %v5872_v10, 16  ;;  %v2289_v29 = vrot.slane %v2287_v56, 4 }
  0x73   : > { %4528 = vmatprep.mubr.bf16.mxu0 %v5856_v58  ;;  %4557 = vmatpush3.bf16.msra.mxu0 %v5109_v14  ;;  %v2292_v39 = vrot.slane %v2290_v24, 5  ;;  %v5920_v47 = vcombine.low %v1595_v21, %v1605_v5  ;;  %v1652_v46 = vrot.slane %v1650_v1, 5  ;;  %v5922_v13 = vrot.slane %v2296_v59, 5  ;;  %v5142_v5 = vld [vmem:[%s5371_s12 + $0xc] sm:$0xf] }
  0x74   : > { %v2302_v58 = vrot.slane %v2300_v2, 4  ;;  %4558 = vmatprep.subr.bf16.mxu0 %v5111_v49  ;;  %v1648_v8 = vrot.slane %v1647_v61, 4  ;;  %v1671_v14 = vor.u32 %v1670_v48, %v5891_v27  ;;  %v2020_v24 = vshll.u32 %v5896_v31, 16  ;;  %v5108_v61 = vld [vmem:[%s6554_s2 + $0x190] sm:$0xff]  }
  0x75   : > { %v6666_v33 = vrot.slane %v5380_v12, 5  ;;  %v2007_v2 = vor.u32 %v2006_v53, %v2003_v4  ;;  %v2017_v59 = vor.u32 %v2016_v34, %v5907_v23  ;;  %v2596_v1 = vrot.slane %v5904_v63, 5 }
  0x76   : > { %v3925_v56 = vrot.slane %v5142_v5, 9  ;;  %v1662_v48 = vrot.slane %v1661_v15, 4  ;;  %v2293_v12 = vor.u32 %v2292_v39, %v2289_v29  ;;  %v2303_v53 = vor.u32 %v2302_v58, %v5922_v13 }
  0x77   : > { %4321 = vmatmul.mubr.bf16.vlgmr.msra.gmra.mrb[0].mxu1 %v5459_v20  ;;  %v2595_v21 = vrot.slane %v6666_v33, 4  ;;  %v1676_v20 = vrot.slane %v1674_v51, 5  ;;  %4559 = vmatpush3.bf16.msra.mxu0 %v5111_v49  ;;  %v2306_v4 = vshll.u32 %v5918_v55, 16  ;;  %v1672_v39 = vrot.slane %v1671_v14, 4 }
  0x78   : > { %4353 = vmatpush3.bf16.msra.mxu1 %v5662_v50  ;;  %4324 = vmatprep.mubr.bf16.mxu1 %v5470_v38  ;;  %v6667_v50 = vrot.slane %v5390_v17, 5  ;;  %v2022_v49 = vrot.slane %v2020_v24, 5  ;;  %v6669_v58 = vrot.slane %v5393_v18, 5  ;;  %v1629_v17 = vsel %vm5428_vm5, %v5885_v57, %v5836_v43  ;;  %v5143_v24 = vld [vmem:[%s5371_s12] sm:$0xf]  ;;  %v5110_v43 = vld [vmem:[%s6554_s2 + $0x198] sm:$0xff]  }
  0x79   : > { %4354 = vmatprep.subr.bf16.mxu1 %v5106_v7  ;;  %v5948_v34 = vsel %vm5401_vm2, %v2595_v21, %v2596_v1  ;;  %4592 = vmatprep.subr.bf16.mxu0 %v5927_v26  ;;  %v2008_v21 = vrot.slane %v2007_v2, 4  ;;  %v2018_v1 = vrot.slane %v2017_v59, 4  ;;  %v1643_v18 = vsel %vm5428_vm5, %v5888_v25, %v5850_v28 }
  0x7a   : > { %v2602_v33 = vrot.slane %v6667_v50, 4  ;;  %v6668_v5 = vmov %v6667_v50  ;;  %v3956_v15 = vcombine.low %v5419_v32, %v5948_v34  ;;  %4529 = vmatmul.mubr.bf16.gmra.mrb[16].mxu0 %v5865_v30  ;;  %v5144_v50 = vld [vmem:[%s5371_s12 + $0x4] sm:$0xf]  ;;  %v1653_v57 = vsel %vm5428_vm5, %v1648_v8, %v1652_v46 }
  0x7b   : > { %v2601_v51 = vsel %vm5401_vm2, %v3925_v56, %v6668_v5  ;;  %v1298_v56 = vshll.u32 %v5143_v24, 16  ;;  %v1304_v5 = vshll.u32 %v5144_v50, 16  ;;  %4532 = vmatprep.mubr.bf16.mxu0 %v5920_v47  ;;  %v2304_v2 = vrot.slane %v2303_v53, 4 }
  0x7c   : > { %v2604_v29 = vsel %vm5401_vm2, %v2602_v33, %v6669_v58  ;;  %4355 = vmatpush3.bf16.msra.mxu1 %v5106_v7  ;;  %v2294_v7 = vrot.slane %v2293_v12, 4  ;;  %v2308_v59 = vrot.slane %v2306_v4, 5  ;;  %v1308_v33 = vshrl.u32 %v5144_v50, 16 }
  0x7d   : > { %v5966_v14 = vcombine.low %v2601_v51, %v2604_v29  ;;  %4356 = vmatprep.subr.bf16.mxu1 %v5108_v61  ;;  %v6670_v28 = vsel %vm5428_vm5, %v5834_v9, %v5800_v36  ;;  %v1667_v51 = vsel %vm5428_vm5, %v1662_v48, %v5891_v27  ;;  %v6671_v46 = vshrl.u32 %v5377_v11, 16  ;;  %v5112_v11 = vld [vmem:[%s6554_s2 + $0x1a0] sm:$0xff]   ;;  %v5145_v27 = vld [vmem:[%s5371_s12 + $0x18] sm:$0xf]  ;;  %v5146_v29 = vld [vmem:[%s5371_s12 + $0x1c] sm:$0xf] }
  0x7e   : > { %v5986_v25 = vcombine.low %v6670_v28, %v1629_v17  ;;  %v1677_v12 = vsel %vm5428_vm5, %v1672_v39, %v1676_v20  ;;  %v2013_v9 = vsel %vm5428_vm5, %v2008_v21, %v5907_v23  ;;  %v2023_v36 = vsel %vm5428_vm5, %v2018_v1, %v2022_v49  ;;  %v6027_v21 = vld [vmem:[%s5371_s12 + $0x20] sm:$0x1] }
  0x7f   : > { %4325 = vmatmul.mubr.bf16.gmra.mrb[4].mxu1 %v5476_v45  ;;  %v5993_v8 = vrot.slane %v6671_v46, 4  ;;  %v6003_v53 = vcombine.low %v1643_v18, %v1653_v57  ;;  %v3926_v48 = vrot.slane %v5145_v27, 9  ;;  %v6009_v20 = vrot.slane %v1298_v56, 5  ;;  %v5114_v18 = vld [vmem:[%s6554_s2 + $0x1a8] sm:$0xff]  }
  0x80   : > { %4328 = vmatprep.mubr.bf16.mxu1 %v5518_v37  ;;  %4357 = vmatpush3.bf16.msra.mxu1 %v5108_v61  ;;  %v6011_v61 = vrot.slane %v1304_v5, 5  ;;  %v2299_v23 = vsel %vm5428_vm5, %v2294_v7, %v5922_v13  ;;  %v2309_v4 = vsel %vm5428_vm5, %v2304_v2, %v2308_v59  ;;  %v6018_v39 = vrot.slane %v1308_v33, 4  ;;  %v5116_v33 = vld [vmem:[%s6554_s2 + $0x1b0] sm:$0xff]  }
  0x81   : > { %4358 = vmatprep.subr.bf16.mxu1 %v5110_v43  ;;  %v6020_v49 = vcombine.low %v1667_v51, %v1677_v12  ;;  %v6022_v58 = vcombine.low %v2013_v9, %v2023_v36  ;;  %v2607_v17 = vrot.slane %v5146_v29, 5  ;;  %v2610_v1 = vrot.slane %v6027_v21, 5  ;;  %v6672_v51 = vld [vmem:[#allocation26_spill] sm:$0xff]  ;;  %v6673_v12 = vld [vmem:[#allocation11_spill] sm:$0xff]  ;;  %v6675_v29 = vld [vmem:[#allocation16_spill] sm:$0xff] }
  0x82   : > { %4533 = vmatmul.mubr.bf16.gmra.mrb[20].mxu0 %v5986_v25  ;;  %v3931_v13 = vrot.slane %v5515_v35, 9  ;;  %v2642_v24 = vrot.slane %v5523_v42, 5  ;;  %v2645_v56 = vrot.slane %v5526_v40, 5  ;;  %v6034_v50 = vcombine.low %v2299_v23, %v2309_v4  ;;  %v6674_v23 = vld [vmem:[#allocation15_spill] sm:$0xff] }
  0x83   : > { %4536 = vmatprep.mubr.bf16.mxu0 %v6003_v53  ;;  %v6038_v5 = vsel %vm5401_vm2, %v3926_v48, %v2607_v17  ;;  %v3932_v42 = vrot.slane %v5536_v54, 9  ;;  %v2649_v7 = vrot.slane %v5545_v62, 5  ;;  %v2652_v2 = vrot.slane %v5552_v3, 5  ;;  %v6063_v62 = vld [vmem:[%s5371_s12 + $0x34] sm:$0xf] }
  0x84   : > { %4359 = vmatpush3.bf16.msra.mxu1 %v5110_v43  ;;  %v6044_v43 = vld [vmem:[%s5371_s12 + $0x28] sm:$0xf]  ;;  %v2643_v40 = vsel %vm5401_vm2, %v3931_v13, %v2642_v24  ;;  %v2644_v57 = vrot.slane %v2642_v24, 4  ;;  %v6053_v59 = vrot.slane %v2607_v17, 4  ;;  %v3933_v28 = vrot.slane %v5594_v60, 9  ;;  %v6676_v13 = vld [vmem:[#allocation29_spill] sm:$0xff] }
  0x85   : > { %4360 = vmatprep.subr.bf16.mxu1 %v5112_v11  ;;  %v2614_v35 = vrot.slane %v6044_v43, 5  ;;  %v2656_v54 = vrot.slane %v5604_v0, 5  ;;  %v2659_v46 = vrot.slane %v6672_v51, 5  ;;  %v2621_v3 = vrot.slane %v6063_v62, 5 }
  0x86   : > { %v2646_v9 = vsel %vm5401_vm2, %v2644_v57, %v2645_v56  ;;  %v2650_v36 = vsel %vm5401_vm2, %v3932_v42, %v2649_v7  ;;  %v2651_v27 = vrot.slane %v2649_v7, 4  ;;  %v2663_v17 = vrot.slane %v6675_v29, 5  ;;  %v6677_v56 = vld [vmem:[#allocation19_spill] sm:$0xff]  ;;  %v6678_v7 = vld [vmem:[#allocation21_spill] sm:$0xff] }
  0x87   : > { %4329 = vmatmul.mubr.bf16.gmra.mrb[8].mxu1 %v5520_v41  ;;  %v6070_v60 = vcombine.low %v2643_v40, %v2646_v9  ;;  %v2657_v0 = vsel %vm5401_vm2, %v3933_v28, %v2656_v54  ;;  %v2658_v48 = vrot.slane %v2656_v54, 4  ;;  %v2666_v24 = vrot.slane %v6676_v13, 5  ;;  %v6679_v28 = vld [vmem:[#allocation33_spill] sm:$0xff] }
  0x88   : > { %4332 = vmatprep.mubr.bf16.mxu1 %v6673_v12  ;;  %4361 = vmatpush3.bf16.msra.mxu1 %v5112_v11  ;;  %v3934_v11 = vrot.slane %v6674_v23, 9  ;;  %v2653_v4 = vsel %vm5401_vm2, %v2651_v27, %v2652_v2  ;;  %v3935_v57 = vrot.slane %v6677_v56, 9  ;;  %v2670_v51 = vrot.slane %v6678_v7, 5  ;;  %v6680_v23 = vld [vmem:[#allocation22_spill] sm:$0xff]  ;;  %v6683_v7 = vld [vmem:[#allocation13_spill] sm:$0xff] }
  0x89   : > { %4362 = vmatprep.subr.bf16.mxu1 %v5114_v18  ;;  %v6080_v42 = vcombine.low %v2650_v36, %v2653_v4  ;;  %v2660_v40 = vsel %vm5401_vm2, %v2658_v48, %v2659_v46  ;;  %v2673_v54 = vrot.slane %v6679_v28, 5  ;;  %v2665_v27 = vrot.slane %v2663_v17, 4  ;;  %v5119_v46 = vld [vmem:[%s6554_s2 + $0x1b8] sm:$0xff]  }
  0x8a   : > { %4537 = vmatmul.mubr.bf16.gmra.mrb[24].mxu0 %v6020_v49  ;;  %v6087_v9 = vcombine.low %v2657_v0, %v2660_v40  ;;  %v2664_v2 = vsel %vm5401_vm2, %v3934_v11, %v2663_v17  ;;  %v3936_v29 = vrot.slane %v6680_v23, 9  ;;  %v2671_v36 = vsel %vm5401_vm2, %v3935_v57, %v2670_v51  ;;  %v6682_v17 = vld [vmem:[#allocation24_spill] sm:$0xff]  ;;  %v6684_v23 = vld [vmem:[#allocation18_spill] sm:$0xff] }
  0x8b   : > { %4540 = vmatprep.mubr.bf16.mxu0 %v6022_v58  ;;  %v2672_v48 = vrot.slane %v2670_v51, 4  ;;  %v2680_v4 = vrot.slane %v5761_v16, 5  ;;  %v2667_v11 = vsel %vm5401_vm2, %v2665_v27, %v2666_v24  ;;  %v3937_v13 = vrot.slane %v6682_v17, 9  ;;  %v6688_v17 = vld [vmem:[#allocation31_spill] sm:$0xff] }
  0x8c   : > { %4363 = vmatpush3.bf16.msra.mxu1 %v5114_v18  ;;  %v6681_v18 = vld [vmem:[#allocation23_spill] sm:$0xff]  ;;  %v2684_v56 = vrot.slane %v5669_v52, 5  ;;  %v2687_v40 = vrot.slane %v5767_v19, 5  ;;  %v6106_v28 = vcombine.low %v2664_v2, %v2667_v11  ;;  %v3938_v27 = vrot.slane %v5681_v6, 9 }
  0x8d   : > { %4364 = vmatprep.subr.bf16.mxu1 %v5116_v33  ;;  %v2677_v0 = vrot.slane %v6681_v18, 5  ;;  %v2674_v57 = vsel %vm5401_vm2, %v2672_v48, %v2673_v54  ;;  %v6121_v54 = vld [vmem:[%s6554_s2 + $0x40] sm:$0xff]   ;;  %v6687_v18 = vld [vmem:[#allocation30_spill] sm:$0xff]  ;;  %v1311_v21 = vor.u32 %v6018_v39, %v6011_v61 }
  0x8e   : > { %v6113_v24 = vcombine.low %v2671_v36, %v2674_v57  ;;  %v2685_v52 = vsel %vm5401_vm2, %v3937_v13, %v2684_v56  ;;  %v2686_v19 = vrot.slane %v2684_v56, 4  ;;  %v2698_v13 = vrot.slane %v6688_v17, 5 }
  0x8f   : > { %4333 = vmatmul.mubr.bf16.gmra.mrb[12].mxu1 %v6683_v7  ;;  %v2678_v51 = vsel %vm5401_vm2, %v3936_v29, %v2677_v0  ;;  %v2679_v16 = vrot.slane %v2677_v0, 4  ;;  %v6685_v29 = vld [vmem:[#allocation28_spill] sm:$0xff]  ;;  %v3939_v0 = vrot.slane %v6687_v18, 9  ;;  %v2701_v56 = vrot.slane %v5872_v10, 5  ;;  %v5151_v18 = vld [vmem:[%s5371_s12 + $0x2c] sm:$0x1] }
  0x90   : > { %4336 = vmatprep.mubr.bf16.mxu1 %v6684_v23  ;;  %4365 = vmatpush3.bf16.msra.mxu1 %v5116_v33  ;;  %v2691_v48 = vrot.slane %v6685_v29, 5  ;;  %v6686_v33 = vld [vmem:[#allocation36_spill] sm:$0xff]  ;;  %v2688_v6 = vsel %vm5401_vm2, %v2686_v19, %v2687_v40  ;;  %v2700_v19 = vrot.slane %v2698_v13, 4  ;;  %v1301_v10 = vor.u32 %v6009_v20, %v5993_v8 }
  0x91   : > { %4366 = vmatprep.subr.bf16.mxu1 %v5119_v46  ;;  %v2681_v2 = vsel %vm5401_vm2, %v2679_v16, %v2680_v4  ;;  %v2694_v36 = vrot.slane %v6686_v33, 5  ;;  %v2611_v4 = vsel %vm5401_vm2, %v6053_v59, %v2610_v1  ;;  %v6139_v57 = vcombine.low %v2685_v52, %v2688_v6  ;;  %v6689_v59 = vld [vmem:[#allocation37_spill] sm:$0xff]  ;;  %v6690_v52 = vld [vmem:[#allocation38_spill] sm:$0xff] }
  0x92   : > { %v6128_v11 = vcombine.low %v2678_v51, %v2681_v2  ;;  %v2692_v16 = vsel %vm5401_vm2, %v3938_v27, %v2691_v48  ;;  %v2693_v51 = vrot.slane %v2691_v48, 4  ;;  %4541 = vmatmul.mubr.bf16.gmra.mrb[28].mxu0 %v6034_v50  ;;  %v2699_v40 = vsel %vm5401_vm2, %v3939_v0, %v2698_v13  ;;  %v6692_v48 = vld [vmem:[#allocation25_spill] sm:$0xff] }
  0x93   : > { %4560 = vmatprep.mubr.bf16.mxu0 %v3956_v15  ;;  %v1314_v50 = vshll.u32 %v5904_v63, 16  ;;  %v3028_v8 = vrot.slane %v6690_v52, 5  ;;  %v2702_v39 = vsel %vm5401_vm2, %v2700_v19, %v2701_v56  ;;  %v1302_v32 = vrot.slane %v1301_v10, 4  ;;  %v6691_v15 = vld [vmem:[#allocation20_spill] sm:$0xff]  ;;  %v5150_v33 = vld [vmem:[%s5371_s12 + $0x24] sm:$0xf] }
  0x94   : > { %4367 = vmatpush3.bf16.msra.mxu1 %v5119_v46  ;;  %v2695_v1 = vsel %vm5401_vm2, %v2693_v51, %v2694_v36  ;;  %v3980_v46 = vrot.slane %v6689_v59, 9  ;;  %v1312_v34 = vrot.slane %v1311_v21, 4  ;;  %v6164_v27 = vcombine.low %v2699_v40, %v2702_v39  ;;  %v5115_v19 = vld [vmem:[%s6554_s2 + $0x148] sm:$0xff]  }
  0x95   : > { %4400 = vmatprep.subr.bf16.mxu1 %v6121_v54  ;;  %v6159_v20 = vcombine.low %v2692_v16, %v2695_v1  ;;  %v1316_v2 = vrot.slane %v1314_v50, 5  ;;  %v3030_v29 = vrot.slane %v3028_v8, 4  ;;  %v3927_v36 = vrot.slane %v5150_v33, 9  ;;  %v5152_v16 = vld [vmem:[%s5371_s12 + $0x30] sm:$0xf] }
  0x96   : > { %v3029_v63 = vsel %vm5401_vm2, %v3980_v46, %v3028_v8  ;;  %v2617_v0 = vrot.slane %v5151_v18, 5  ;;  %v1307_v6 = vsel %vm5428_vm5, %v1302_v32, %v6011_v61  ;;  %v3031_v17 = vrot.slane %v5896_v31, 5  ;;  %v5153_v31 = vld [vmem:[%s5371_s12 + $0x38] sm:$0x1]  ;;  %v5154_v50 = vld [vmem:[%s5371_s12 + $0x40] sm:$0xf] }
  0x97   : > { %4337 = vmatmul.mubr.bf16.gmra.mrb[16].mxu1 %v6691_v15  ;;  %v6176_v13 = vcombine.low %v6038_v5, %v2611_v4  ;;  %v2616_v56 = vrot.slane %v2614_v35, 4  ;;  %v3928_v51 = vrot.slane %v5152_v16, 9  ;;  %v1317_v40 = vsel %vm5428_vm5, %v1312_v34, %v1316_v2  ;;  %v5155_v8 = vld [vmem:[%s5371_s12 + $0x4c] sm:$0xf]  ;;  %v6693_v32 = vld [vmem:[#allocation27_spill] sm:$0xff]  ;;  %v6694_v2 = vld [vmem:[#allocation32_spill] sm:$0xff] }
  0x98   : > { %4340 = vmatprep.mubr.bf16.mxu1 %v6692_v48  ;;  %v2623_v61 = vrot.slane %v2621_v3, 4  ;;  %v2624_v5 = vrot.slane %v5153_v31, 5  ;;  %v6189_v4 = vcombine.low %v1307_v6, %v1317_v40  ;;  %v3032_v10 = vsel %vm5401_vm2, %v3030_v29, %v3031_v17  ;;  %v5157_v33 = vld [vmem:[%s5371_s12 + $0x44] sm:$0x1]  ;;  %v5158_v18 = vld [vmem:[%s5371_s12 + $0x48] sm:$0xf] }
  0x99   : > { %v6193_v21 = vcombine.low %v3029_v63, %v3032_v10  ;;  %v2615_v44 = vsel %vm5401_vm2, %v3927_v36, %v2614_v35  ;;  %v2618_v1 = vsel %vm5401_vm2, %v2616_v56, %v2617_v0  ;;  %v2628_v46 = vrot.slane %v5154_v50, 5  ;;  %v5117_v35 = vld [vmem:[%s6554_s2 + $0x150] sm:$0xff]   ;;  %v5120_v16 = vld [vmem:[%s6554_s2 + $0x158] sm:$0xff]   ;;  %v5122_v31 = vld [vmem:[%s6554_s2 + $0x160] sm:$0xff]  }
  0x9a   : > { %4561 = vmatmul.mubr.bf16.vlgmr.msra.gmra.mrb[0].mxu0 %v5966_v14  ;;  %v2625_v43 = vsel %vm5401_vm2, %v2623_v61, %v2624_v5  ;;  %v2635_v39 = vrot.slane %v5155_v8, 5  ;;  %v6216_v34 = vcombine.low %v2615_v44, %v2618_v1  ;;  %v2631_v36 = vrot.slane %v5157_v33, 5  ;;  %v5159_v17 = vld [vmem:[%s5371_s12 + $0x50] sm:$0x1]  ;;  %v6695_v5 = vld [vmem:[#allocation34_spill] sm:$0xff] }
  0x9b   : > { %4593 = vmatpush3.bf16.msra.mxu0 %v5927_v26  ;;  %4564 = vmatprep.mubr.bf16.mxu0 %v6176_v13  ;;  %v2622_v26 = vsel %vm5401_vm2, %v3928_v51, %v2621_v3  ;;  %v5156_v3 = vld [vmem:[%s5371_s12 + $0x3c] sm:$0xf]  ;;  %v2630_v29 = vrot.slane %v2628_v46, 4  ;;  %v3930_v0 = vrot.slane %v5158_v18, 9  ;;  %v2638_v56 = vrot.slane %v5159_v17, 5  ;;  %v6696_v44 = vld [vmem:[#allocation35_spill] sm:$0xff] }
  0x9c   : > { %4594 = vmatprep.subr.bf16.mxu0 %v5115_v19  ;;  %v6219_v62 = vcombine.low %v2622_v26, %v2625_v43  ;;  %v3929_v63 = vrot.slane %v5156_v3, 9  ;;  %v2637_v6 = vrot.slane %v2635_v39, 4  ;;  %v5124_v50 = vld [vmem:[%s6554_s2 + $0x168] sm:$0xff]   ;;  %v5126_v26 = vld [vmem:[%s6554_s2 + $0x170] sm:$0xff]   ;;  %v6702_v18 = vld [vmem:[#allocation8_spill] sm:$0xff]  ;;  %s5168_s12 = scalar_lea.vmem %s6499_s30, 4096 }
  0x9d   : > { %v2632_v40 = vsel %vm5401_vm2, %v2630_v29, %v2631_v36  ;;  %v6697_v43 = vld [vmem:[#allocation6_spill] sm:$0xff]  ;;  %v5125_v8 = vld [vmem:[%s6554_s2 + $0x50] sm:$0xff]   ;;  %v6700_v29 = vld [vmem:[#allocation5_spill] sm:$0xff]  ;;  %p5169_p12 = scmp.ne.s32.totalorder %s6499_s30, %s5168_s12  ;;  %p5176_p2 = scmp.lt.s32.totalorder %s5174_s6, %s5168_s12 }
  0x9e   : > { %v2629_v51 = vsel %vm5401_vm2, %v3929_v63, %v2628_v46  ;;  %v2639_v61 = vsel %vm5401_vm2, %v2637_v6, %v2638_v56  ;;  %v6252_v46 = vcombine.low %v6689_v59, %v6690_v52  ;;  %v5128_v59 = vld [vmem:[%s6554_s2 + $0x178] sm:$0xff]   ;;  %v5123_v52 = vld [vmem:[%s6554_s2 + $0x48] sm:$0xff]   ;;  %v5140_v3 = vld [vmem:[%s6554_s2 + $0x230] sm:$0xff]  }
  0x9f   : > { %4341 = vmatmul.mubr.bf16.gmra.mrb[20].mxu1 %v6693_v32  ;;  %4595 = vmatpush3.bf16.msra.mxu0 %v5115_v19  ;;  %v2636_v19 = vsel %vm5401_vm2, %v3930_v0, %v2635_v39  ;;  %v6242_v10 = vcombine.low %v2629_v51, %v2632_v40  ;;  %v6698_v39 = vld [vmem:[#allocation42_spill] sm:$0xff]  ;;  %v5141_v63 = vld [vmem:[%s6554_s2 + $0x238] sm:$0xff]   ;;  %v6701_v33 = vld [vmem:[#allocation7_spill] sm:$0xff]  ;;  %p5170_p13 = pnand %p5169_p12, %p5316_p4  ;;  %p5177_p3 = por %p5176_p2, %p5175_p1 }
  0xa0   : > { %4344 = vmatprep.mubr.bf16.mxu1 %v6694_v2  ;;  %4596 = vmatprep.subr.bf16.mxu0 %v5117_v35  ;;  %v6245_v1 = vcombine.low %v2636_v19, %v2639_v61  ;;  %v5162_v36 = vld [vmem:[%s6554_s2 + $0x110] sm:$0xff]   ;;  %v6703_v0 = vld [vmem:[#allocation9_spill] sm:$0xff]  ;;  %v5163_v6 = vld [vmem:[%s6554_s2 + $0x118] sm:$0xff]  }
  0xa1   : > { %v5164_v17 = vld [vmem:[%s6554_s2 + $0x120] sm:$0xff]   ;;  %v6704_v56 = vld [vmem:[#allocation10_spill] sm:$0xff]  ;;  %v5166_v40 = vld [vmem:[%s6554_s2 + $0x130] sm:$0xff]   ;;  %p5171_p0 = pneg %p5170_p13 }
  0xa2   : > { %4565 = vmatmul.mubr.bf16.gmra.mrb[4].mxu0 %v6216_v34  ;;  %v5165_v51 = vld [vmem:[%s6554_s2 + $0x128] sm:$0xff]   ;;  %v6707_v61 = vld [vmem:[#allocation17_spill] sm:$0xff] }
  0xa3   : > { %4568 = vmatprep.mubr.bf16.mxu0 %v6219_v62  ;;  %4597 = vmatpush3.bf16.msra.mxu0 %v5117_v35  ;;  %v5130_v35 = vld [vmem:[%s6554_s2 + $0x200] sm:$0xff]   ;;  %v6706_v19 = vld [vmem:[#allocation14_spill] sm:$0xff]  ;;  %p5178_p5 = pnand %p5177_p3, %p5171_p0 }
  0xa4   : > { %4598 = vmatprep.subr.bf16.mxu0 %v5120_v16 }
  0xa7   : > { %4345 = vmatmul.mubr.bf16.gmra.mrb[24].mxu1 %v6695_v5  ;;  %4599 = vmatpush3.bf16.msra.mxu0 %v5120_v16  ;;  %v6705_v16 = vld [vmem:[#allocation12_spill] sm:$0xff] }
  0xa8   : > { %4348 = vmatprep.mubr.bf16.mxu1 %v6696_v44  ;;  %4600 = vmatprep.subr.bf16.mxu0 %v5122_v31 }
  0xaa   : > { %4569 = vmatmul.mubr.bf16.gmra.mrb[8].mxu0 %v6242_v10 }
  0xab   : > { %4572 = vmatprep.mubr.bf16.mxu0 %v6245_v1  ;;  %4601 = vmatpush3.bf16.msra.mxu0 %v5122_v31  ;;  %v5167_v31 = vld [vmem:[%s6554_s2 + $0x138] sm:$0xff]  }
  0xac   : > { %4602 = vmatprep.subr.bf16.mxu0 %v5124_v50 }
  0xaf   : > { %4349 = vmatmul.mubr.bf16.gmra.mrb[28].mxu1 %v6252_v46  ;;  %4603 = vmatpush3.bf16.msra.mxu0 %v5124_v50  ;;  %v6425_v50 = vld [vmem:[%s6555_s3] ss:$0 sm:$0xff] }
  0xb0   : > { %4368 = vmatprep.mubr.bf16.mxu1 %v6697_v43  ;;  %4604 = vmatprep.subr.bf16.mxu0 %v5126_v26 }
  0xb2   : > { %4573 = vmatmul.mubr.bf16.gmra.mrb[12].mxu0 %v6070_v60 }
  0xb3   : > { %4576 = vmatprep.mubr.bf16.mxu0 %v6080_v42  ;;  %4605 = vmatpush3.bf16.msra.mxu0 %v5126_v26 }
  0xb4   : > { %4606 = vmatprep.subr.bf16.mxu0 %v5128_v59 }
  0xb7   : > { %4369 = vmatmul.mubr.bf16.vlgmr.msra.gmra.mrb[0].mxu1 %v5470_v38  ;;  %4607 = vmatpush3.bf16.msra.mxu0 %v5128_v59  ;;  %v5127_v38 = vld [vmem:[%s6554_s2 + $0x58] sm:$0xff]  }
  0xb8   : > { %4401 = vmatpush3.bf16.msra.mxu1 %v6121_v54  ;;  %4372 = vmatprep.mubr.bf16.mxu1 %v5476_v45  ;;  %v5129_v45 = vld [vmem:[%s6554_s2 + $0x60] sm:$0xff]   ;;  %v5131_v54 = vld [vmem:[%s6554_s2 + $0x68] sm:$0xff]  }
  0xb9   : > { %4402 = vmatprep.subr.bf16.mxu1 %v5123_v52  ;;  %4640 = vmatprep.subr.bf16.mxu0 %v5130_v35 }
  0xba   : > { %4577 = vmatmul.mubr.bf16.gmra.mrb[16].mxu0 %v6087_v9 }
  0xbb   : > { %4580 = vmatprep.mubr.bf16.mxu0 %v6106_v28 }
  0xbc   : > { %4403 = vmatpush3.bf16.msra.mxu1 %v5123_v52 }
  0xbd   : > { %4404 = vmatprep.subr.bf16.mxu1 %v5125_v8 }
  0xbf   : > { %4373 = vmatmul.mubr.bf16.gmra.mrb[4].mxu1 %v5518_v37  ;;  %v5133_v37 = vld [vmem:[%s6554_s2 + $0x70] sm:$0xff]  }
  0xc0   : > { %4376 = vmatprep.mubr.bf16.mxu1 %v5520_v41  ;;  %4405 = vmatpush3.bf16.msra.mxu1 %v5125_v8  ;;  %v5136_v41 = vld [vmem:[%s6554_s2 + $0x78] sm:$0xff]  }
  0xc1   : > { %4406 = vmatprep.subr.bf16.mxu1 %v5127_v38 }
  0xc2   : > { %4581 = vmatmul.mubr.bf16.gmra.mrb[20].mxu0 %v6113_v24 }
  0xc3   : > { %4584 = vmatprep.mubr.bf16.mxu0 %v6128_v11 }
  0xc4   : > { %4407 = vmatpush3.bf16.msra.mxu1 %v5127_v38 }
  0xc5   : > { %4408 = vmatprep.subr.bf16.mxu1 %v5129_v45 }
  0xc7   : > { %4377 = vmatmul.mubr.bf16.gmra.mrb[8].mxu1 %v6673_v12  ;;  %v5160_v12 = vld [vmem:[%s6554_s2 + $0x100] sm:$0xff]  }
  0xc8   : > { %4380 = vmatprep.mubr.bf16.mxu1 %v6683_v7  ;;  %4409 = vmatpush3.bf16.msra.mxu1 %v5129_v45  ;;  %v5132_v7 = vld [vmem:[%s6554_s2 + $0x208] sm:$0xff]  }
  0xc9   : > { %4410 = vmatprep.subr.bf16.mxu1 %v5131_v54 }
  0xca   : > { %4585 = vmatmul.mubr.bf16.gmra.mrb[24].mxu0 %v6139_v57 }
  0xcb   : > { %4588 = vmatprep.mubr.bf16.mxu0 %v6159_v20 }
  0xcc   : > { %4411 = vmatpush3.bf16.msra.mxu1 %v5131_v54 }
  0xcd   : > { %4412 = vmatprep.subr.bf16.mxu1 %v5133_v37 }
  0xcf   : > { %4381 = vmatmul.mubr.bf16.gmra.mrb[12].mxu1 %v6684_v23  ;;  %v5137_v23 = vld [vmem:[%s6554_s2 + $0x218] sm:$0xff]  }
  0xd0   : > { %4384 = vmatprep.mubr.bf16.mxu1 %v6691_v15  ;;  %4413 = vmatpush3.bf16.msra.mxu1 %v5133_v37  ;;  %v5138_v15 = vld [vmem:[%s6554_s2 + $0x220] sm:$0xff]  }
  0xd1   : > { %4414 = vmatprep.subr.bf16.mxu1 %v5136_v41 }
  0xd2   : > { %4589 = vmatmul.mubr.bf16.gmra.mrb[28].mxu0 %v6164_v27 }
  0xd3   : > { %4608 = vmatprep.mubr.bf16.mxu0 %v5966_v14  ;;  %v5134_v14 = vld [vmem:[%s6554_s2 + $0x210] sm:$0xff]  }
  0xd4   : > { %4415 = vmatpush3.bf16.msra.mxu1 %v5136_v41 }
  0xd5   : > { %4688 = vmatprep.subr.bf16.mxu1 %v5160_v12 }
  0xd7   : > { %4385 = vmatmul.mubr.bf16.gmra.mrb[16].mxu1 %v6692_v48  ;;  %v5139_v48 = vld [vmem:[%s6554_s2 + $0x228] sm:$0xff]  }
  0xd8   : > { %4388 = vmatprep.mubr.bf16.mxu1 %v6693_v32  ;;  %v6699_v32 = vld [vmem:[#allocation41_spill] sm:$0xff] }
  0xda   : > { %4609 = vmatmul.mubr.bf16.vlgmr.msra.gmra.mrb[0].mxu0 %v6176_v13 }
  0xdb   : > { %4641 = vmatpush3.bf16.msra.mxu0 %v5130_v35  ;;  %4612 = vmatprep.mubr.bf16.mxu0 %v6216_v34 }
  0xdc   : > { %4642 = vmatprep.subr.bf16.mxu0 %v5132_v7 }
  0xdf   : > { %4389 = vmatmul.mubr.bf16.gmra.mrb[20].mxu1 %v6694_v2  ;;  %4643 = vmatpush3.bf16.msra.mxu0 %v5132_v7  ;;  %v3825_v2 = vcombine.low %v6699_v32, %v6698_v39 }
  0xe0   : > { %4392 = vmatprep.mubr.bf16.mxu1 %v6695_v5  ;;  %4644 = vmatprep.subr.bf16.mxu0 %v5134_v14  ;;  %v6708_v5 = vld [vmem:[#allocation39_spill] sm:$0xff] }
  0xe2   : > { %4613 = vmatmul.mubr.bf16.gmra.mrb[4].mxu0 %v6219_v62 }
  0xe3   : > { %4616 = vmatprep.mubr.bf16.mxu0 %v6242_v10  ;;  %4645 = vmatpush3.bf16.msra.mxu0 %v5134_v14 }
  0xe4   : > { %4646 = vmatprep.subr.bf16.mxu0 %v5137_v23 }
  0xe7   : > { %4393 = vmatmul.mubr.bf16.gmra.mrb[24].mxu1 %v6696_v44  ;;  %4647 = vmatpush3.bf16.msra.mxu0 %v5137_v23  ;;  %v6709_v44 = vld [vmem:[#allocation40_spill] sm:$0xff] }
  0xe8   : > { %4396 = vmatprep.mubr.bf16.mxu1 %v6252_v46  ;;  %4648 = vmatprep.subr.bf16.mxu0 %v5138_v15 }
  0xea   : > { %4617 = vmatmul.mubr.bf16.gmra.mrb[8].mxu0 %v6245_v1 }
  0xeb   : > { %4620 = vmatprep.mubr.bf16.mxu0 %v6070_v60  ;;  %4649 = vmatpush3.bf16.msra.mxu0 %v5138_v15 }
  0xec   : > { %4650 = vmatprep.subr.bf16.mxu0 %v5139_v48 }
  0xef   : > { %4397 = vmatmul.mubr.bf16.gmra.mrb[28].mxu1 %v3825_v2  ;;  %4651 = vmatpush3.bf16.msra.mxu0 %v5139_v48 }
  0xf0   : > { %4416 = vmatprep.mubr.bf16.mxu1 %v6189_v4  ;;  %4652 = vmatprep.subr.bf16.mxu0 %v5140_v3  ;;  %v5161_v4 = vld [vmem:[%s6554_s2 + $0x108] sm:$0xff]  }
  0xf2   : > { %4621 = vmatmul.mubr.bf16.gmra.mrb[12].mxu0 %v6080_v42 }
  0xf3   : > { %4624 = vmatprep.mubr.bf16.mxu0 %v6087_v9  ;;  %4653 = vmatpush3.bf16.msra.mxu0 %v5140_v3 }
  0xf4   : > { %4654 = vmatprep.subr.bf16.mxu0 %v5141_v63 }
  0xf7   : > { %4417 = vmatmul.mubr.bf16.vlgmr.msra.gmra.mrb[0].mxu1 %v6700_v29  ;;  %4655 = vmatpush3.bf16.msra.mxu0 %v5141_v63 }
  0xf8   : > { %4696 = vmatpush3.bf16.msra.mxu1 %v5160_v12  ;;  %4420 = vmatprep.mubr.bf16.mxu1 %v6701_v33 }
  0xf9   : > { %4689 = vmatprep.subr.bf16.mxu1 %v5161_v4 }
  0xfa   : > { %4625 = vmatmul.mubr.bf16.gmra.mrb[16].mxu0 %v6106_v28 }
  0xfb   : > { %4628 = vmatprep.mubr.bf16.mxu0 %v6113_v24 }
  0xfc   : > { %4697 = vmatpush3.bf16.msra.mxu1 %v5161_v4 }
  0xfd   : > { %4690 = vmatprep.subr.bf16.mxu1 %v5162_v36 }
  0xff   : > { %4421 = vmatmul.mubr.bf16.gmra.mrb[4].mxu1 %v6702_v18 }
 0x100   : > { %4424 = vmatprep.mubr.bf16.mxu1 %v6703_v0  ;;  %4698 = vmatpush3.bf16.msra.mxu1 %v5162_v36 }
 0x101   : > { %4691 = vmatprep.subr.bf16.mxu1 %v5163_v6 }
 0x102   : > { %4629 = vmatmul.mubr.bf16.gmra.mrb[20].mxu0 %v6128_v11 }
 0x103   : > { %4632 = vmatprep.mubr.bf16.mxu0 %v6139_v57 }
 0x104   : > { %4699 = vmatpush3.bf16.msra.mxu1 %v5163_v6 }
 0x105   : > { %4692 = vmatprep.subr.bf16.mxu1 %v5164_v17 }
 0x107   : > { %4425 = vmatmul.mubr.bf16.gmra.mrb[8].mxu1 %v6704_v56 }
 0x108   : > { %4428 = vmatprep.mubr.bf16.mxu1 %v6705_v16  ;;  %4700 = vmatpush3.bf16.msra.mxu1 %v5164_v17 }
 0x109   : > { %4693 = vmatprep.subr.bf16.mxu1 %v5165_v51 }
 0x10a   : > { %4633 = vmatmul.mubr.bf16.gmra.mrb[24].mxu0 %v6159_v20 }
 0x10b   : > { %4636 = vmatprep.mubr.bf16.mxu0 %v6164_v27 }
 0x10c   : > { %4701 = vmatpush3.bf16.msra.mxu1 %v5165_v51 }
 0x10d   : > { %4694 = vmatprep.subr.bf16.mxu1 %v5166_v40 }
 0x10f   : > { %4429 = vmatmul.mubr.bf16.gmra.mrb[12].mxu1 %v6706_v19 }
 0x110   : > { %4432 = vmatprep.mubr.bf16.mxu1 %v6707_v61  ;;  %4702 = vmatpush3.bf16.msra.mxu1 %v5166_v40 }
 0x111   : > { %4695 = vmatprep.subr.bf16.mxu1 %v5167_v31 }
 0x112   : > { %4637 = vmatmul.mubr.bf16.gmra.mrb[28].mxu0 %v6193_v21 }
 0x113   : > { %4656 = vmatprep.mubr.bf16.mxu0 %v6176_v13 }
 0x114   : > { %4703 = vmatpush3.bf16.msra.mxu1 %v5167_v31 }
 0x117   : > { %4433 = vmatmul.mubr.bf16.gmra.mrb[16].mxu1 %v6708_v5 }
 0x118   : > { %4436 = vmatprep.mubr.bf16.mxu1 %v6709_v44 }
 0x11a   : > { %4657 = vmatmul.mubr.bf16.vlgmr.msra.gmra.mrb[0].mxu0 %v6216_v34 }
 0x11b   : > { %4660 = vmatprep.mubr.bf16.mxu0 %v6219_v62 }
 0x11f   : > { %4437 = vmatmul.mubr.bf16.gmra.mrb[20].mxu1 %v5865_v30 }
 0x120   : > { %4440 = vmatprep.mubr.bf16.mxu1 %v5920_v47 }
 0x122   : > { %4661 = vmatmul.mubr.bf16.gmra.mrb[4].mxu0 %v6242_v10 }
 0x123   : > { %4664 = vmatprep.mubr.bf16.mxu0 %v6245_v1 }
 0x127   : > { %4441 = vmatmul.mubr.bf16.gmra.mrb[24].mxu1 %v5986_v25 }
 0x128   : > { %4444 = vmatprep.mubr.bf16.mxu1 %v6003_v53 }
 0x12a   : > { %4665 = vmatmul.mubr.bf16.gmra.mrb[8].mxu0 %v6070_v60  ;;  %v3298_v60 = vrot.slane %v6698_v39, 5 }
 0x12b   : > { %4668 = vmatprep.mubr.bf16.mxu0 %v6080_v42 }
 0x12c   : > { %v3300_v42 = vrot.slane %v3298_v60, 4 }
 0x12f   : > { %4445 = vmatmul.mubr.bf16.gmra.mrb[28].mxu1 %v6020_v49 }
 0x130   : > { %4480 = vmatprep.mubr.bf16.mxu1 %v6708_v5 }
 0x132   : > { %4669 = vmatmul.mubr.bf16.gmra.mrb[12].mxu0 %v6087_v9  ;;  %v3301_v9 = vrot.slane %v5918_v55, 5 }
 0x133   : > { %4672 = vmatprep.mubr.bf16.mxu0 %v6106_v28 }
 0x137   : > { %4481 = vmatmul.mubr.bf16.vlgmr.msra.gmra.mrb[16].mxu1 %v6709_v44 }
 0x138   : > { %4484 = vmatprep.mubr.bf16.mxu1 %v5865_v30  ;;  %v4006_v30 = vrot.slane %v6699_v32, 9 }
 0x13a   : > { %4673 = vmatmul.mubr.bf16.gmra.mrb[16].mxu0 %v6113_v24 }
 0x13b   : > { %4676 = vmatprep.mubr.bf16.mxu0 %v6128_v11 }
 0x13f   : > { %4485 = vmatmul.mubr.bf16.gmra.mrb[20].mxu1 %v5920_v47  ;;  %v3299_v47 = vsel %vm5401_vm2, %v4006_v30, %v3298_v60 }
 0x140   : > { %4488 = vmatprep.mubr.bf16.mxu1 %v5986_v25  ;;  %v3302_v25 = vsel %vm5401_vm2, %v3300_v42, %v3301_v9 }
 0x142   : > { %4677 = vmatmul.mubr.bf16.gmra.mrb[20].mxu0 %v6139_v57 }
 0x143   : > { %4680 = vmatprep.mubr.bf16.mxu0 %v6159_v20 }
 0x147   : > { %4489 = vmatmul.mubr.bf16.gmra.mrb[24].mxu1 %v6003_v53  ;;  %v4023_v53 = vcombine.low %v3299_v47, %v3302_v25 }
 0x148   : > { %4492 = vmatprep.mubr.bf16.mxu1 %v6020_v49 }
 0x14a   : > { %4681 = vmatmul.mubr.bf16.gmra.mrb[24].mxu0 %v6164_v27 }
 0x14b   : > { %4684 = vmatprep.mubr.bf16.mxu0 %v6193_v21 }
 0x14f   : > { %4493 = vmatmul.mubr.bf16.gmra.mrb[28].mxu1 %v6022_v58 }
 0x152   : > { %4685 = vmatmul.mubr.bf16.gmra.mrb[28].mxu0 %v4023_v53 }
 0x1ca   : > { %v4418_v49 = vpop.f32.mrb[0].mxu1 }
 0x1cb   : > { %v1841_v28 = vpop.f32.mrb[1].mxu1  ;;  %v4704_v46 = vadd.f32 %v4418_v49, %v6425_v50 }
 0x1cc   : > { %v4419_v24 = vpop.f32.mrb[2].mxu1  ;;  %v4706_v26 = vadd.f32 %v6425_v50, %v1841_v28 }
 0x1cd   : > { %v1844_v55 = vpop.f32.mrb[3].mxu1  ;;  %v4708_v59 = vadd.f32 %v4419_v24, %v6425_v50 }
 0x1ce   : > { %v4710_v8 = vadd.f32 %v6425_v50, %v1844_v55 }
 0x1d2   : > { %v4422_v11 = vpop.f32.mrb[4].mxu1 }
 0x1d3   : > { %v1857_v57 = vpop.f32.mrb[5].mxu1  ;;  %v4712_v12 = vadd.f32 %v4422_v11, %v6425_v50 }
 0x1d4   : > { %v4423_v20 = vpop.f32.mrb[6].mxu1  ;;  %v4714_v7 = vadd.f32 %v6425_v50, %v1857_v57 }
 0x1d5   : > { %v1860_v27 = vpop.f32.mrb[7].mxu1  ;;  %v4716_v23 = vadd.f32 %v4423_v20, %v6425_v50 }
 0x1d6   : > { %v4718_v39 = vadd.f32 %v6425_v50, %v1860_v27 }
 0x1da   : > { %v4426_v13 = vpop.f32.mrb[8].mxu1 }
 0x1db   : > { %v1873_v21 = vpop.f32.mrb[9].mxu1  ;;  %v4720_v33 = vadd.f32 %v4426_v13, %v6425_v50 }
 0x1dc   : > { %v4427_v34 = vpop.f32.mrb[10].mxu1  ;;  %v4722_v4 = vadd.f32 %v6425_v50, %v1873_v21 }
 0x1dd   : > { %v1876_v62 = vpop.f32.mrb[11].mxu1  ;;  %v4724_v18 = vadd.f32 %v4427_v34, %v6425_v50 }
 0x1de   : > { %v4726_v17 = vadd.f32 %v6425_v50, %v1876_v62 }
 0x1e2   : > { %v4430_v22 = vpop.f32.mrb[12].mxu1 }
 0x1e3   : > { %v1889_v10 = vpop.f32.mrb[13].mxu1  ;;  %v4728_v61 = vadd.f32 %v4430_v22, %v6425_v50 }
 0x1e4   : > { %v4431_v1 = vpop.f32.mrb[14].mxu1  ;;  %v4730_v31 = vadd.f32 %v6425_v50, %v1889_v10 }
 0x1e5   : > { %v1892_v58 = vpop.f32.mrb[15].mxu1  ;;  %v4732_v44 = vadd.f32 %v4431_v1, %v6425_v50 }
 0x1e6   : > { %v4734_v42 = vadd.f32 %v6425_v50, %v1892_v58 }
 0x1ed   : > { %v4658_v43 = vpop.f32.mrb[0].mxu0 }
 0x1ee   : > { %v4705_v52 = vadd.f32 %v4704_v46, %v4658_v43  ;;  %v3406_v35 = vpop.f32.mrb[1].mxu0 }
 0x1ef   : > { %v4707_v38 = vadd.f32 %v4706_v26, %v3406_v35  ;;  %v4659_v45 = vpop.f32.mrb[2].mxu0 }
 0x1f0   : > { %3567 = vst [vmem:[%s6433_s21 + $0x10] sm:$0xff] %v4705_v52  ;;  %v4709_v54 = vadd.f32 %v4708_v59, %v4659_v45  ;;  %v3409_v37 = vpop.f32.mrb[3].mxu0 }
 0x1f1   : > { %3565 = vst [vmem:[%s6433_s21] sm:$0xff] %v4707_v38  ;;  %v4711_v41 = vadd.f32 %v4710_v8, %v3409_v37 }
 0x1f2   : > { %3568 = vst [vmem:[%s6433_s21 + $0x18] sm:$0xff] %v4709_v54 }
 0x1f3   : > { %3566 = vst [vmem:[%s6433_s21 + $0x8] sm:$0xff] %v4711_v41 }
 0x1f5   : > { %v4662_v14 = vpop.f32.mrb[4].mxu0 }
 0x1f6   : > { %v4713_v15 = vadd.f32 %v4712_v12, %v4662_v14  ;;  %v3422_v48 = vpop.f32.mrb[5].mxu0 }
 0x1f7   : > { %v4715_v32 = vadd.f32 %v4714_v7, %v3422_v48  ;;  %v4663_v2 = vpop.f32.mrb[6].mxu0 }
 0x1f8   : > { %3571 = vst [vmem:[%s6433_s21 + $0x30] sm:$0xff] %v4713_v15  ;;  %v4717_v3 = vadd.f32 %v4716_v23, %v4663_v2  ;;  %v3425_v63 = vpop.f32.mrb[7].mxu0 }
 0x1f9   : > { %3569 = vst [vmem:[%s6433_s21 + $0x20] sm:$0xff] %v4715_v32  ;;  %v4719_v29 = vadd.f32 %v4718_v39, %v3425_v63 }
 0x1fa   : > { %3572 = vst [vmem:[%s6433_s21 + $0x38] sm:$0xff] %v4717_v3 }
 0x1fb   : > { %3570 = vst [vmem:[%s6433_s21 + $0x28] sm:$0xff] %v4719_v29 }
 0x1fd   : > { %v4666_v36 = vpop.f32.mrb[8].mxu0 }
 0x1fe   : > { %v4721_v0 = vadd.f32 %v4720_v33, %v4666_v36  ;;  %v3438_v6 = vpop.f32.mrb[9].mxu0 }
 0x1ff   : > { %v4723_v56 = vadd.f32 %v4722_v4, %v3438_v6  ;;  %v4667_v16 = vpop.f32.mrb[10].mxu0 }
 0x200   : > { %3575 = vst [vmem:[%s6433_s21 + $0x50] sm:$0xff] %v4721_v0  ;;  %v4725_v51 = vadd.f32 %v4724_v18, %v4667_v16  ;;  %v3441_v40 = vpop.f32.mrb[11].mxu0 }
 0x201   : > { %3573 = vst [vmem:[%s6433_s21 + $0x40] sm:$0xff] %v4723_v56  ;;  %v4727_v19 = vadd.f32 %v4726_v17, %v3441_v40 }
 0x202   : > { %3576 = vst [vmem:[%s6433_s21 + $0x58] sm:$0xff] %v4725_v51 }
 0x203   : > { %3574 = vst [vmem:[%s6433_s21 + $0x48] sm:$0xff] %v4727_v19 }
 0x205   : > { %v4670_v5 = vpop.f32.mrb[12].mxu0 }
 0x206   : > { %v4729_v60 = vadd.f32 %v4728_v61, %v4670_v5  ;;  %v3454_v30 = vpop.f32.mrb[13].mxu0 }
 0x207   : > { %v4731_v9 = vadd.f32 %v4730_v31, %v3454_v30  ;;  %v4671_v47 = vpop.f32.mrb[14].mxu0 }
 0x208   : > { %3579 = vst [vmem:[%s6433_s21 + $0x70] sm:$0xff] %v4729_v60  ;;  %v4733_v25 = vadd.f32 %v4732_v44, %v4671_v47  ;;  %v3457_v53 = vpop.f32.mrb[15].mxu0 }
 0x209   : > { %3577 = vst [vmem:[%s6433_s21 + $0x60] sm:$0xff] %v4731_v9  ;;  %v4735_v28 = vadd.f32 %v4734_v42, %v3457_v53 }
 0x20a   : > { %v4482_v49 = vpop.f32.mrb[16].mxu1  ;;  %3580 = vst [vmem:[%s6433_s21 + $0x78] sm:$0xff] %v4733_v25 }
 0x20b   : > { %v2191_v24 = vpop.f32.mrb[17].mxu1  ;;  %v4736_v55 = vadd.f32 %v4482_v49, %v6425_v50  ;;  %3578 = vst [vmem:[%s6433_s21 + $0x68] sm:$0xff] %v4735_v28 }
 0x20c   : > { %v4483_v11 = vpop.f32.mrb[18].mxu1  ;;  %v4738_v57 = vadd.f32 %v6425_v50, %v2191_v24 }
 0x20d   : > { %v2194_v20 = vpop.f32.mrb[19].mxu1  ;;  %v4740_v27 = vadd.f32 %v4483_v11, %v6425_v50  ;;  %v4674_v13 = vpop.f32.mrb[16].mxu0 }
 0x20e   : > { %v4742_v21 = vadd.f32 %v6425_v50, %v2194_v20  ;;  %v4737_v34 = vadd.f32 %v4736_v55, %v4674_v13  ;;  %v3470_v62 = vpop.f32.mrb[17].mxu0 }
 0x20f   : > { %v4739_v22 = vadd.f32 %v4738_v57, %v3470_v62  ;;  %v4675_v10 = vpop.f32.mrb[18].mxu0 }
 0x210   : > { %3583 = vst [vmem:[%s6433_s21 + $0x90] sm:$0xff] %v4737_v34  ;;  %v4741_v1 = vadd.f32 %v4740_v27, %v4675_v10  ;;  %v3473_v58 = vpop.f32.mrb[19].mxu0 }
 0x211   : > { %3581 = vst [vmem:[%s6433_s21 + $0x80] sm:$0xff] %v4739_v22  ;;  %v4743_v26 = vadd.f32 %v4742_v21, %v3473_v58 }
 0x212   : > { %v4486_v46 = vpop.f32.mrb[20].mxu1  ;;  %3584 = vst [vmem:[%s6433_s21 + $0x98] sm:$0xff] %v4741_v1 }
 0x213   : > { %v2207_v43 = vpop.f32.mrb[21].mxu1  ;;  %v4744_v59 = vadd.f32 %v4486_v46, %v6425_v50  ;;  %3582 = vst [vmem:[%s6433_s21 + $0x88] sm:$0xff] %v4743_v26 }
 0x214   : > { %v4487_v52 = vpop.f32.mrb[22].mxu1  ;;  %v4746_v35 = vadd.f32 %v6425_v50, %v2207_v43 }
 0x215   : > { %v2210_v8 = vpop.f32.mrb[23].mxu1  ;;  %v4748_v38 = vadd.f32 %v4487_v52, %v6425_v50  ;;  %v4678_v45 = vpop.f32.mrb[20].mxu0 }
 0x216   : > { %v4750_v54 = vadd.f32 %v6425_v50, %v2210_v8  ;;  %v4745_v37 = vadd.f32 %v4744_v59, %v4678_v45  ;;  %v3486_v41 = vpop.f32.mrb[21].mxu0 }
 0x217   : > { %v4747_v12 = vadd.f32 %v4746_v35, %v3486_v41  ;;  %v4679_v7 = vpop.f32.mrb[22].mxu0 }
 0x218   : > { %3587 = vst [vmem:[%s6433_s21 + $0xb0] sm:$0xff] %v4745_v37  ;;  %v4749_v14 = vadd.f32 %v4748_v38, %v4679_v7  ;;  %v3489_v23 = vpop.f32.mrb[23].mxu0 }
 0x219   : > { %3585 = vst [vmem:[%s6433_s21 + $0xa0] sm:$0xff] %v4747_v12  ;;  %v4751_v48 = vadd.f32 %v4750_v54, %v3489_v23 }
 0x21a   : > { %v4490_v15 = vpop.f32.mrb[24].mxu1  ;;  %3588 = vst [vmem:[%s6433_s21 + $0xb8] sm:$0xff] %v4749_v14 }
 0x21b   : > { %v2223_v39 = vpop.f32.mrb[25].mxu1  ;;  %v4752_v32 = vadd.f32 %v4490_v15, %v6425_v50  ;;  %3586 = vst [vmem:[%s6433_s21 + $0xa8] sm:$0xff] %v4751_v48 }
 0x21c   : > { %v4491_v2 = vpop.f32.mrb[26].mxu1  ;;  %v4754_v3 = vadd.f32 %v6425_v50, %v2223_v39 }
 0x21d   : > { %v2226_v63 = vpop.f32.mrb[27].mxu1  ;;  %v4756_v29 = vadd.f32 %v4491_v2, %v6425_v50  ;;  %v4682_v33 = vpop.f32.mrb[24].mxu0 }
 0x21e   : > { %v4758_v4 = vadd.f32 %v6425_v50, %v2226_v63  ;;  %v4753_v36 = vadd.f32 %v4752_v32, %v4682_v33  ;;  %v3502_v18 = vpop.f32.mrb[25].mxu0 }
 0x21f   : > { %v4755_v0 = vadd.f32 %v4754_v3, %v3502_v18  ;;  %v4683_v6 = vpop.f32.mrb[26].mxu0 }
 0x220   : > { %3591 = vst [vmem:[%s6433_s21 + $0xd0] sm:$0xff] %v4753_v36  ;;  %v4757_v17 = vadd.f32 %v4756_v29, %v4683_v6  ;;  %v3505_v56 = vpop.f32.mrb[27].mxu0 }
 0x221   : > { %3589 = vst [vmem:[%s6433_s21 + $0xc0] sm:$0xff] %v4755_v0  ;;  %v4759_v51 = vadd.f32 %v4758_v4, %v3505_v56 }
 0x222   : > { %v4494_v16 = vpop.f32.mrb[28].mxu1  ;;  %3592 = vst [vmem:[%s6433_s21 + $0xd8] sm:$0xff] %v4757_v17 }
 0x223   : > { %v2239_v40 = vpop.f32.mrb[29].mxu1  ;;  %v4760_v19 = vadd.f32 %v4494_v16, %v6425_v50  ;;  %3590 = vst [vmem:[%s6433_s21 + $0xc8] sm:$0xff] %v4759_v51 }
 0x224   : > { %v4495_v61 = vpop.f32.mrb[30].mxu1  ;;  %v4762_v31 = vadd.f32 %v6425_v50, %v2239_v40 }
 0x225   : > { %v2242_v5 = vpop.f32.mrb[31].mxu1  ;;  %v4764_v44 = vadd.f32 %v4495_v61, %v6425_v50  ;;  %v4686_v60 = vpop.f32.mrb[28].mxu0 }
 0x226   : > { %v4766_v30 = vadd.f32 %v6425_v50, %v2242_v5  ;;  %v4761_v42 = vadd.f32 %v4760_v19, %v4686_v60  ;;  %v3518_v9 = vpop.f32.mrb[29].mxu0 }
 0x227   : > { %v4763_v47 = vadd.f32 %v4762_v31, %v3518_v9  ;;  %v4687_v25 = vpop.f32.mrb[30].mxu0 }
 0x228   : > { %3595 = vst [vmem:[%s6433_s21 + $0xf0] sm:$0xff] %v4761_v42  ;;  %v4765_v53 = vadd.f32 %v4764_v44, %v4687_v25  ;;  %v3521_v49 = vpop.f32.mrb[31].mxu0 }
 0x229   : > { %3593 = vst [vmem:[%s6433_s21 + $0xe0] sm:$0xff] %v4763_v47  ;;  %v4767_v50 = vadd.f32 %v4766_v30, %v3521_v49 }
 0x22a   : > { %3596 = vst [vmem:[%s6433_s21 + $0xf8] sm:$0xff] %v4765_v53 }
 0x22b   : > { %3594 = vst [vmem:[%s6433_s21 + $0xe8] sm:$0xff] %v4767_v50 }
 0x22c   : > { %5181 = shalt.err (!%p5178_p5)
}
 0x22d   : > { %s5182_s7 = scalar_lea.hbm %s6497_s26, 4096  ;;  %s5186_s10 = scalar_lea.hbm %s6556_s4, 8192 }
 0x22e   : > { %p5183_p6 = scmp.ne.s32.totalorder %s6497_s26, %s5182_s7  ;;  %p5187_p10 = scmp.lt.u32.totalorder %s6497_s26, %s6556_s4 }
 0x22f   : > { %p5188_p11 = scmp.lt.u32.totalorder %s5186_s10, %s5182_s7  ;;  %p5190_p13 = scmp.lt.u32.totalorder %s5182_s7, %s6497_s26 }
 0x230   : > { %p5184_p7 = pnand %p5183_p6, %p5316_p4 }
 0x231   : > { %p5189_p12 = por %p5188_p11, %p5187_p10 }
 0x232   : > { %p5185_p9 = pneg %p5184_p7 }
 0x233   : > { %p5191_p0 = por %p5190_p13, %p5189_p12 }
 0x235   : > { %p5192_p1 = pnand %p5191_p0, %p5185_p9 }
 0x237   : > { %5195 = shalt.err (!%p5192_p1)
}
 0x238   : > { %s5249_s21 = smov 128   ;;  %s5250_s11 = smov 8  }
 0x239   : > { %4994 = dma.vmem_to_hbm [thread:$0]  (%p5316_p4), %s6499_s30, 4096, %s6497_s26, %s6506_s18, %s5249_s21, %s5249_s21, %s5250_s11  }
 0x23a PF: > { %p5001_p2 = scmp.ge.s32.totalorder %s5246_s20, 2  ;;  %s3630_s22 = sand.u32 1, %s5226_s15  }
 0x23b   : > { %s3631_s24 = scalar_lea.sflag [#allocation3], %s3630_s22 }
 0x23c   : > { %p4997_p3 = pnand %p5001_p2, %p5323_p8 }
 0x23e   : > { %5221 = dma.done.wait (!%p4997_p3), %s3631_s24, 4096  }
 0x23f   : > { %5223 = vsyncadd (!%p4997_p3), %s3631_s24, 4294963200  ;;  %s17_s20 = sadd.s32 1, %s5246_s20   ;;  %s6710_s15 = smov %s5230_s16 }
 0x240   : > { %p14_p5 = scmp.ge.s32.totalorder %s17_s20, 4   ;;  %s6711_s16 = smov %s5234_s17 }
 0x241   : > { %s6712_s17 = smov %s5329_s28  ;;  %s6713_s18 = smov %s5242_s19 }
 0x242   : > { %s6714_s19 = smov %s6716_s23  ;;  %16 = sbr.rel (!%p14_p5) target bundleno = 4 (0x4), region = 88 }
 0x249   :  { %3636 = vsyncpa [#allocation3], 1 }
 0x24a   :  { %3638 = vsyncpa [#allocation3 + $0x1], 1 }

</bundles_post_ra>
